<compile_context>
chip_gen: v6e
topology: v6e:2x2x1
jax: 0.10.0
libtpu: 0.0.40
codegen_flags: <defaults>
</compile_context>

<pallas_src>
import functools
import math

import numpy as np
import jax
import jax.numpy as jnp
from jax.experimental import pallas as pl
from jax.experimental.pallas import tpu as pltpu

n_embd = 64
n_heads = 8
d_k = n_embd // n_heads
block_size = 256
LN_EPS = 1e-5      # PyTorch nn.LayerNorm default
NEG_INF = -1e30    # finite mask value (no inf arithmetic corner cases)


def _layer_norm(z, g, b):
    mu = jnp.mean(z, axis=-1, keepdims=True)
    var = jnp.mean((z - mu) ** 2, axis=-1, keepdims=True)
    return (z - mu) * jax.lax.rsqrt(var + LN_EPS) * g + b


def block_kernel(x_ref, bias_ref,
                 qkv_w_ref, qkv_b_ref, out_w_ref, out_b_ref,
                 ln1_g_ref, ln1_b_ref,
                 ff1_w_ref, ff1_b_ref, ff2_w_ref, ff2_b_ref,
                 ln2_g_ref, ln2_b_ref,
                 o_ref, *, q_tile):
    bb, T, C = x_ref.shape
    rows = bb * T
    x2d = x_ref[...].reshape(rows, C)            # merge (batch, time) -> rows

    # ---- QKV projection for the whole (bb*T, C) slab.  qkv_w was permuted
    # host-side into contiguous Q | K | V column slabs and the 1/sqrt(d_k)
    # scale was folded into the Q columns, so no extra in-kernel multiply. ----
    qkv = jnp.dot(x2d, qkv_w_ref[...],
                  preferred_element_type=jnp.float32) + qkv_b_ref[...]
    q3 = qkv[:, :C].reshape(bb, T, C)
    k3 = qkv[:, C:2 * C].reshape(bb, T, C)
    v3 = qkv[:, 2 * C:].reshape(bb, T, C)

    # ---- causal attention, tiled over query rows; keys strictly above the
    # diagonal tile are never touched.  Softmax normalization is deferred to a
    # reciprocal scale of the (bb, q_tile, d_k) head output. ----
    tile_outs = []
    for qi in range(T // q_tile):
        q_lo = qi * q_tile
        k_hi = q_lo + q_tile                      # last visible key column + 1
        bias_t = bias_ref[q_lo:q_lo + q_tile, 0:k_hi]     # (q_tile, k_hi)
        head_outs = []
        for h in range(n_heads):
            lo = h * d_k
            q_h = q3[:, q_lo:q_lo + q_tile, lo:lo + d_k]  # (bb, q_tile, d_k)
            k_h = k3[:, 0:k_hi, lo:lo + d_k]              # (bb, k_hi,  d_k)
            v_h = v3[:, 0:k_hi, lo:lo + d_k]
            s = jnp.einsum('bqd,bkd->bqk', q_h, k_h,
                           preferred_element_type=jnp.float32) + bias_t
            m = jnp.max(s, axis=-1, keepdims=True)
            p = jnp.exp(s - m)                    # unnormalized probabilities
            l = jnp.sum(p, axis=-1, keepdims=True)
            ctx = jnp.einsum('bqk,bkd->bqd', p, v_h,
                             preferred_element_type=jnp.float32)
            head_outs.append(ctx * pl.reciprocal(l, approx=False))
        tile_outs.append(jnp.concatenate(head_outs, axis=-1))   # (bb,q_tile,C)
    attn = tile_outs[0] if len(tile_outs) == 1 else jnp.concatenate(tile_outs, axis=1)

    # ---- single output projection over all rows (un-folded) ----
    attn2d = jnp.dot(attn.reshape(rows, C), out_w_ref[...],
                     preferred_element_type=jnp.float32) + out_b_ref[...]

    # ---- residual + LayerNorm 1 ----
    h1 = _layer_norm(x2d + attn2d, ln1_g_ref[...], ln1_b_ref[...])

    # ---- feed-forward: Linear -> ReLU -> Linear ----
    ff = jnp.dot(h1, ff1_w_ref[...],
                 preferred_element_type=jnp.float32) + ff1_b_ref[...]
    ff = jnp.maximum(ff, 0.0)
    ff = jnp.dot(ff, ff2_w_ref[...],
                 preferred_element_type=jnp.float32) + ff2_b_ref[...]

    # ---- LayerNorm 2: PyTorch module does norm2(out + out) ----
    y = _layer_norm(ff + ff, ln2_g_ref[...], ln2_b_ref[...])

    o_ref[...] = y.reshape(bb, T, C).astype(o_ref.dtype)


def _qkv_permutation():
    # Head h's (q, k, v) occupy columns [h*3*d_k, (h+1)*3*d_k) in the PyTorch
    # layout.  Permute into contiguous Q | K | V slabs (C columns each).
    base = np.arange(n_heads)[:, None] * (3 * d_k) + np.arange(d_k)[None, :]
    return np.concatenate([base.reshape(-1),
                           (base + d_k).reshape(-1),
                           (base + 2 * d_k).reshape(-1)])


def _pick_q_tile(T):
    # 64-row causal query tiles for long sequences (skips ~37% of the (T,T)
    # attention work at T=256); small / non-divisible T runs as a single tile.
    if T >= 128 and T % 64 == 0:
        return 64
    return T


def _vmem_capacity_bytes():
    # Per-TensorCore VMEM: 64 MiB on v7x, 128 MiB on v5e/v6e.  Fall back to the
    # smallest figure if the query is unavailable.
    try:
        info = pltpu.get_tpu_info()
        cap = int(getattr(info, "vmem_capacity_bytes", 0) or 0)
        if cap > 0:
            return min(cap, 128 * 1024 * 1024)
    except Exception:
        pass
    return 64 * 1024 * 1024


def _step_vmem_bytes(bb, T, q_tile):
    # Rough per-grid-step f32 working set: double-buffered x/out blocks, the
    # (double-buffered) weights + causal bias, the qkv/q/k/v/ffn slabs, and a
    # few heads' worth of live (bb, q_tile, T) score/prob temporaries.
    f = 4
    rows = bb * T
    fixed = (2 * T * T + 120_000) * f
    io = 4 * rows * n_embd * f
    acts = rows * (3 + 3 + 4 + 2) * n_embd * f
    attn_tmp = 8 * bb * q_tile * T * f
    return fixed + io + acts + attn_tmp


def _pick_batch_block(B, T, q_tile, budget_bytes):
    bb = 1
    for cand in range(1, B + 1):
        if _step_vmem_bytes(cand, T, q_tile) <= budget_bytes:
            bb = cand
        else:
            break
    if B >= 2:
        # Keep >= 2 grid steps so v7x's two TensorCores can split the
        # "parallel" batch axis; negligible overhead on single-TC chips.
        bb = min(bb, (B + 1) // 2)
    return max(1, bb)


def transformer_block(x, params):
    B, T, C = x.shape
    assert C == n_embd and T <= block_size and T % 8 == 0

    # Host-side weight prep: permute qkv columns into Q | K | V slabs and fold
    # the 1/sqrt(d_k) attention scale into the Q columns (weight and bias).
    perm = _qkv_permutation()
    scale = 1.0 / math.sqrt(d_k)
    qkv_w = params["qkv_w"][:, perm].at[:, :n_embd].multiply(scale)
    qkv_b = params["qkv_b"][perm].at[:n_embd].multiply(scale)

    param_list = [
        qkv_w, qkv_b.reshape(1, -1),
        params["out_w"], params["out_b"].reshape(1, -1),
        params["ln1_g"].reshape(1, -1), params["ln1_b"].reshape(1, -1),
        params["ff1_w"], params["ff1_b"].reshape(1, -1),
        params["ff2_w"], params["ff2_b"].reshape(1, -1),
        params["ln2_g"].reshape(1, -1), params["ln2_b"].reshape(1, -1),
    ]

    # Causal additive bias, built once host-side (no per-step iota/where).
    tril = np.tril(np.ones((T, T), dtype=np.float32))
    bias = jnp.asarray(np.where(tril > 0, 0.0, NEG_INF).astype(np.float32))

    q_tile = _pick_q_tile(T)
    vmem_cap = _vmem_capacity_bytes()
    bb = _pick_batch_block(B, T, q_tile, vmem_cap // 3)

    grid_b = pl.cdiv(B, bb)
    B_pad = grid_b * bb
    if B_pad != B:              # non-divisor batch: pad, run, slice the result
        x = jnp.pad(x, ((0, B_pad - B), (0, 0), (0, 0)))

    in_specs = [pl.BlockSpec((bb, T, C), lambda b: (b, 0, 0)),
                pl.BlockSpec((T, T), lambda b: (0, 0))]
    for p in param_list:
        in_specs.append(pl.BlockSpec(p.shape, lambda b: (0, 0)))

    rows_total = B_pad * T
    avg_kv = (T + q_tile) // 2            # average visible keys under tiling
    n_param_elems = sum(int(np.prod(p.shape)) for p in param_list)
    cost = pl.CostEstimate(
        flops=int(2 * rows_total * C * 3 * C                      # qkv proj
                  + 4 * rows_total * n_heads * avg_kv * d_k       # scores+ctx
                  + 2 * rows_total * C * C                        # out proj
                  + 4 * rows_total * C * 4 * C),                  # ff1 + ff2
        transcendentals=int(rows_total * n_heads * avg_kv),
        bytes_accessed=int(4 * (2 * rows_total * C + T * T + n_param_elems)),
    )

    out = pl.pallas_call(
        functools.partial(block_kernel, q_tile=q_tile),
        out_shape=jax.ShapeDtypeStruct((B_pad, T, C), jnp.float32),
        grid_spec=pltpu.PrefetchScalarGridSpec(
            num_scalar_prefetch=0,
            grid=(grid_b,),
            in_specs=in_specs,
            out_specs=pl.BlockSpec((bb, T, C), lambda b: (b, 0, 0)),
        ),
        compiler_params=pltpu.CompilerParams(
            dimension_semantics=("parallel",),
            vmem_limit_bytes=max(32 * 1024 * 1024, vmem_cap // 2),
        ),
        cost_estimate=cost,
    )(x, bias, *param_list)

    return out[:B] if B_pad != B else out


def init_params(key):
    ks = jax.random.split(key, 4)

    def linear(k, fan_in, fan_out):
        bound = 1.0 / math.sqrt(fan_in)
        kw, kb = jax.random.split(k)
        w = jax.random.uniform(kw, (fan_in, fan_out), jnp.float32, -bound, bound)
        b = jax.random.uniform(kb, (fan_out,), jnp.float32, -bound, bound)
        return w, b

    qkv_w, qkv_b = linear(ks[0], n_embd, 3 * n_embd)
    out_w, out_b = linear(ks[1], n_embd, n_embd)
    ff1_w, ff1_b = linear(ks[2], n_embd, 4 * n_embd)
    ff2_w, ff2_b = linear(ks[3], 4 * n_embd, n_embd)
    return {
        "qkv_w": qkv_w, "qkv_b": qkv_b,
        "out_w": out_w, "out_b": out_b,
        "ln1_g": jnp.ones((n_embd,), jnp.float32),
        "ln1_b": jnp.zeros((n_embd,), jnp.float32),
        "ff1_w": ff1_w, "ff1_b": ff1_b,
        "ff2_w": ff2_w, "ff2_b": ff2_b,
        "ln2_g": jnp.ones((n_embd,), jnp.float32),
        "ln2_b": jnp.zeros((n_embd,), jnp.float32),
    }


def block_reference(x, p):
    """Pure-JAX reference mirroring the PyTorch module exactly."""
    B, T, C = x.shape
    qkv = x @ p["qkv_w"] + p["qkv_b"]
    qkv = qkv.reshape(B, T, n_heads, 3 * d_k).transpose(0, 2, 1, 3)
    q, k, v = jnp.split(qkv, 3, axis=-1)
    s = jnp.einsum("bhqd,bhkd->bhqk", q, k) / math.sqrt(d_k)
    mask = jnp.tril(jnp.ones((T, T), dtype=bool))
    s = jnp.where(mask, s, -jnp.inf)
    a = jax.nn.softmax(s, axis=-1)
    o = jnp.einsum("bhqk,bhkd->bhqd", a, v).transpose(0, 2, 1, 3).reshape(B, T, C)
    o = o @ p["out_w"] + p["out_b"]

    def ln(z, g, b):
        mu = z.mean(-1, keepdims=True)
        var = ((z - mu) ** 2).mean(-1, keepdims=True)
        return (z - mu) / jnp.sqrt(var + LN_EPS) * g + b

    h1 = ln(x + o, p["ln1_g"], p["ln1_b"])
    f = jnp.maximum(h1 @ p["ff1_w"] + p["ff1_b"], 0.0) @ p["ff2_w"] + p["ff2_b"]
    return ln(f + f, p["ln2_g"], p["ln2_b"])


if __name__ == "__main__":
    key = jax.random.PRNGKey(0)
    k_x, k_p = jax.random.split(key)

    B, T = 2, 8
    x = jax.random.normal(k_x, (B, T, n_embd), dtype=jnp.float32)
    params = init_params(k_p)

    out = jax.block_until_ready(transformer_block(x, params))
    ref = block_reference(x, params)

    assert out.shape == (B, T, n_embd)
    assert bool(jnp.all(jnp.isfinite(out)))
    assert jnp.allclose(out, ref, atol=2e-4, rtol=2e-4), float(jnp.max(jnp.abs(out - ref)))

    print("KERNEL_OK")
</pallas_src>

<mosaic_0001>
module attributes {stable_mosaic.version = 11 : i64} {
  func.func @block_kernel(%arg0: i32, %arg1: memref<1x8x64xf32, #tpu.memory_space<vmem>>, %arg2: memref<8x8xf32, #tpu.memory_space<vmem>>, %arg3: memref<64x192xf32, #tpu.memory_space<vmem>>, %arg4: memref<1x192xf32, #tpu.memory_space<vmem>>, %arg5: memref<64x64xf32, #tpu.memory_space<vmem>>, %arg6: memref<1x64xf32, #tpu.memory_space<vmem>>, %arg7: memref<1x64xf32, #tpu.memory_space<vmem>>, %arg8: memref<1x64xf32, #tpu.memory_space<vmem>>, %arg9: memref<64x256xf32, #tpu.memory_space<vmem>>, %arg10: memref<1x256xf32, #tpu.memory_space<vmem>>, %arg11: memref<256x64xf32, #tpu.memory_space<vmem>>, %arg12: memref<1x64xf32, #tpu.memory_space<vmem>>, %arg13: memref<1x64xf32, #tpu.memory_space<vmem>>, %arg14: memref<1x64xf32, #tpu.memory_space<vmem>>, %arg15: memref<1x8x64xf32, #tpu.memory_space<vmem>>) attributes {dimension_semantics = [#tpu.dimension_semantics<parallel>], iteration_bounds = array<i64: 2>, scalar_prefetch = 0 : i64, scratch_operands = 0 : i64, tpu.core_type = #tpu.core_type<tc>, window_params = [{transform_indices = @transform_0, window_bounds = array<i64: 1, 8, 64>}, {pipeline_mode = #tpu.pipeline_mode<synchronous>, transform_indices = @transform_1, window_bounds = array<i64: 8, 8>}, {pipeline_mode = #tpu.pipeline_mode<synchronous>, transform_indices = @transform_2, window_bounds = array<i64: 64, 192>}, {pipeline_mode = #tpu.pipeline_mode<synchronous>, transform_indices = @transform_3, window_bounds = array<i64: 1, 192>}, {pipeline_mode = #tpu.pipeline_mode<synchronous>, transform_indices = @transform_4, window_bounds = array<i64: 64, 64>}, {pipeline_mode = #tpu.pipeline_mode<synchronous>, transform_indices = @transform_5, window_bounds = array<i64: 1, 64>}, {pipeline_mode = #tpu.pipeline_mode<synchronous>, transform_indices = @transform_6, window_bounds = array<i64: 1, 64>}, {pipeline_mode = #tpu.pipeline_mode<synchronous>, transform_indices = @transform_7, window_bounds = array<i64: 1, 64>}, {pipeline_mode = #tpu.pipeline_mode<synchronous>, transform_indices = @transform_8, window_bounds = array<i64: 64, 256>}, {pipeline_mode = #tpu.pipeline_mode<synchronous>, transform_indices = @transform_9, window_bounds = array<i64: 1, 256>}, {pipeline_mode = #tpu.pipeline_mode<synchronous>, transform_indices = @transform_10, window_bounds = array<i64: 256, 64>}, {pipeline_mode = #tpu.pipeline_mode<synchronous>, transform_indices = @transform_11, window_bounds = array<i64: 1, 64>}, {pipeline_mode = #tpu.pipeline_mode<synchronous>, transform_indices = @transform_12, window_bounds = array<i64: 1, 64>}, {pipeline_mode = #tpu.pipeline_mode<synchronous>, transform_indices = @transform_13, window_bounds = array<i64: 1, 64>}, {transform_indices = @transform_14, window_bounds = array<i64: 1, 8, 64>}]} {
    %c0 = arith.constant 0 : index
    %c0_0 = arith.constant 0 : index
    %c0_1 = arith.constant 0 : index
    %0 = vector.load %arg1[%c0, %c0_0, %c0_1] : memref<1x8x64xf32, #tpu.memory_space<vmem>>, vector<1x8x64xf32>
    %1 = vector.shape_cast %0 : vector<1x8x64xf32> to vector<8x64xf32>
    %c0_2 = arith.constant 0 : index
    %c0_3 = arith.constant 0 : index
    %2 = vector.load %arg3[%c0_2, %c0_3] : memref<64x192xf32, #tpu.memory_space<vmem>>, vector<64x192xf32>
    %cst = arith.constant dense<0.000000e+00> : vector<8x192xf32>
    %3 = tpu.matmul %1, %2, %cst {dimension_numbers = #tpu.dot_dimension_numbers<[1], [0], [0], [1], [0, 0, 1, 1], [], []>} : vector<8x64xf32>, vector<64x192xf32>, vector<8x192xf32> -> vector<8x192xf32>
    %c0_4 = arith.constant 0 : index
    %c0_5 = arith.constant 0 : index
    %4 = vector.load %arg4[%c0_4, %c0_5] : memref<1x192xf32, #tpu.memory_space<vmem>>, vector<1x192xf32>
    %5 = vector.broadcast %4 : vector<1x192xf32> to vector<8x192xf32>
    %6 = arith.addf %3, %5 : vector<8x192xf32>
    %7 = vector.extract_strided_slice %6 {offsets = [0, 0], sizes = [8, 64], strides = [1, 1]} : vector<8x192xf32> to vector<8x64xf32>
    %8 = vector.shape_cast %7 : vector<8x64xf32> to vector<1x8x64xf32>
    %9 = vector.extract_strided_slice %6 {offsets = [0, 64], sizes = [8, 64], strides = [1, 1]} : vector<8x192xf32> to vector<8x64xf32>
    %10 = vector.shape_cast %9 : vector<8x64xf32> to vector<1x8x64xf32>
    %11 = vector.extract_strided_slice %6 {offsets = [0, 128], sizes = [8, 64], strides = [1, 1]} : vector<8x192xf32> to vector<8x64xf32>
    %12 = vector.shape_cast %11 : vector<8x64xf32> to vector<1x8x64xf32>
    %c0_6 = arith.constant 0 : index
    %c0_7 = arith.constant 0 : index
    %13 = vector.load %arg2[%c0_6, %c0_7] : memref<8x8xf32, #tpu.memory_space<vmem>>, vector<8x8xf32>
    %14 = vector.extract_strided_slice %8 {offsets = [0, 0, 0], sizes = [1, 8, 8], strides = [1, 1, 1]} : vector<1x8x64xf32> to vector<1x8x8xf32>
    %15 = vector.extract_strided_slice %10 {offsets = [0, 0, 0], sizes = [1, 8, 8], strides = [1, 1, 1]} : vector<1x8x64xf32> to vector<1x8x8xf32>
    %16 = vector.extract_strided_slice %12 {offsets = [0, 0, 0], sizes = [1, 8, 8], strides = [1, 1, 1]} : vector<1x8x64xf32> to vector<1x8x8xf32>
    "tpu.trace_start"() <{level = 10 : i32, message = "bqd,bkd->bqk"}> : () -> ()
    %cst_8 = arith.constant dense<0.000000e+00> : vector<1x8x8xf32>
    %17 = tpu.matmul %14, %15, %cst_8 {dimension_numbers = #tpu.dot_dimension_numbers<[2], [2], [1], [1], [0, 0, 0, 1, 1, 1], [0], [0]>} : vector<1x8x8xf32>, vector<1x8x8xf32>, vector<1x8x8xf32> -> vector<1x8x8xf32>
    "tpu.trace_stop"() : () -> ()
    %18 = vector.shape_cast %13 : vector<8x8xf32> to vector<1x8x8xf32>
    %19 = arith.addf %17, %18 : vector<1x8x8xf32>
    %cst_9 = arith.constant dense<0xFF800000> : vector<1x8xf32>
    %20 = vector.multi_reduction <maximumf>, %19, %cst_9 [2] : vector<1x8x8xf32> to vector<1x8xf32>
    %21 = vector.shape_cast %20 : vector<1x8xf32> to vector<1x8x1xf32>
    %22 = vector.broadcast %21 : vector<1x8x1xf32> to vector<1x8x8xf32>
    %23 = arith.subf %19, %22 : vector<1x8x8xf32>
    %24 = math.exp %23 : vector<1x8x8xf32>
    %cst_10 = arith.constant dense<0.000000e+00> : vector<1x8xf32>
    %25 = vector.multi_reduction <add>, %24, %cst_10 [2] : vector<1x8x8xf32> to vector<1x8xf32>
    %26 = vector.shape_cast %25 : vector<1x8xf32> to vector<1x8x1xf32>
    "tpu.trace_start"() <{level = 10 : i32, message = "bqk,bkd->bqd"}> : () -> ()
    %cst_11 = arith.constant dense<0.000000e+00> : vector<1x8x8xf32>
    %27 = tpu.matmul %24, %16, %cst_11 {dimension_numbers = #tpu.dot_dimension_numbers<[2], [1], [1], [2], [0, 0, 0, 1, 1, 2], [0], [0]>} : vector<1x8x8xf32>, vector<1x8x8xf32>, vector<1x8x8xf32> -> vector<1x8x8xf32>
    "tpu.trace_stop"() : () -> ()
    %28 = tpu.reciprocal %26 : vector<1x8x1xf32> -> vector<1x8x1xf32>
    %29 = vector.broadcast %28 : vector<1x8x1xf32> to vector<1x8x8xf32>
    %30 = arith.mulf %27, %29 : vector<1x8x8xf32>
    %31 = vector.extract_strided_slice %8 {offsets = [0, 0, 8], sizes = [1, 8, 8], strides = [1, 1, 1]} : vector<1x8x64xf32> to vector<1x8x8xf32>
    %32 = vector.extract_strided_slice %10 {offsets = [0, 0, 8], sizes = [1, 8, 8], strides = [1, 1, 1]} : vector<1x8x64xf32> to vector<1x8x8xf32>
    %33 = vector.extract_strided_slice %12 {offsets = [0, 0, 8], sizes = [1, 8, 8], strides = [1, 1, 1]} : vector<1x8x64xf32> to vector<1x8x8xf32>
    "tpu.trace_start"() <{level = 10 : i32, message = "bqd,bkd->bqk"}> : () -> ()
    %cst_12 = arith.constant dense<0.000000e+00> : vector<1x8x8xf32>
    %34 = tpu.matmul %31, %32, %cst_12 {dimension_numbers = #tpu.dot_dimension_numbers<[2], [2], [1], [1], [0, 0, 0, 1, 1, 1], [0], [0]>} : vector<1x8x8xf32>, vector<1x8x8xf32>, vector<1x8x8xf32> -> vector<1x8x8xf32>
    "tpu.trace_stop"() : () -> ()
    %35 = vector.shape_cast %13 : vector<8x8xf32> to vector<1x8x8xf32>
    %36 = arith.addf %34, %35 : vector<1x8x8xf32>
    %cst_13 = arith.constant dense<0xFF800000> : vector<1x8xf32>
    %37 = vector.multi_reduction <maximumf>, %36, %cst_13 [2] : vector<1x8x8xf32> to vector<1x8xf32>
    %38 = vector.shape_cast %37 : vector<1x8xf32> to vector<1x8x1xf32>
    %39 = vector.broadcast %38 : vector<1x8x1xf32> to vector<1x8x8xf32>
    %40 = arith.subf %36, %39 : vector<1x8x8xf32>
    %41 = math.exp %40 : vector<1x8x8xf32>
    %cst_14 = arith.constant dense<0.000000e+00> : vector<1x8xf32>
    %42 = vector.multi_reduction <add>, %41, %cst_14 [2] : vector<1x8x8xf32> to vector<1x8xf32>
    %43 = vector.shape_cast %42 : vector<1x8xf32> to vector<1x8x1xf32>
    "tpu.trace_start"() <{level = 10 : i32, message = "bqk,bkd->bqd"}> : () -> ()
    %cst_15 = arith.constant dense<0.000000e+00> : vector<1x8x8xf32>
    %44 = tpu.matmul %41, %33, %cst_15 {dimension_numbers = #tpu.dot_dimension_numbers<[2], [1], [1], [2], [0, 0, 0, 1, 1, 2], [0], [0]>} : vector<1x8x8xf32>, vector<1x8x8xf32>, vector<1x8x8xf32> -> vector<1x8x8xf32>
    "tpu.trace_stop"() : () -> ()
    %45 = tpu.reciprocal %43 : vector<1x8x1xf32> -> vector<1x8x1xf32>
    %46 = vector.broadcast %45 : vector<1x8x1xf32> to vector<1x8x8xf32>
    %47 = arith.mulf %44, %46 : vector<1x8x8xf32>
    %48 = vector.extract_strided_slice %8 {offsets = [0, 0, 16], sizes = [1, 8, 8], strides = [1, 1, 1]} : vector<1x8x64xf32> to vector<1x8x8xf32>
    %49 = vector.extract_strided_slice %10 {offsets = [0, 0, 16], sizes = [1, 8, 8], strides = [1, 1, 1]} : vector<1x8x64xf32> to vector<1x8x8xf32>
    %50 = vector.extract_strided_slice %12 {offsets = [0, 0, 16], sizes = [1, 8, 8], strides = [1, 1, 1]} : vector<1x8x64xf32> to vector<1x8x8xf32>
    "tpu.trace_start"() <{level = 10 : i32, message = "bqd,bkd->bqk"}> : () -> ()
    %cst_16 = arith.constant dense<0.000000e+00> : vector<1x8x8xf32>
    %51 = tpu.matmul %48, %49, %cst_16 {dimension_numbers = #tpu.dot_dimension_numbers<[2], [2], [1], [1], [0, 0, 0, 1, 1, 1], [0], [0]>} : vector<1x8x8xf32>, vector<1x8x8xf32>, vector<1x8x8xf32> -> vector<1x8x8xf32>
    "tpu.trace_stop"() : () -> ()
    %52 = vector.shape_cast %13 : vector<8x8xf32> to vector<1x8x8xf32>
    %53 = arith.addf %51, %52 : vector<1x8x8xf32>
    %cst_17 = arith.constant dense<0xFF800000> : vector<1x8xf32>
    %54 = vector.multi_reduction <maximumf>, %53, %cst_17 [2] : vector<1x8x8xf32> to vector<1x8xf32>
    %55 = vector.shape_cast %54 : vector<1x8xf32> to vector<1x8x1xf32>
    %56 = vector.broadcast %55 : vector<1x8x1xf32> to vector<1x8x8xf32>
    %57 = arith.subf %53, %56 : vector<1x8x8xf32>
    %58 = math.exp %57 : vector<1x8x8xf32>
    %cst_18 = arith.constant dense<0.000000e+00> : vector<1x8xf32>
    %59 = vector.multi_reduction <add>, %58, %cst_18 [2] : vector<1x8x8xf32> to vector<1x8xf32>
    %60 = vector.shape_cast %59 : vector<1x8xf32> to vector<1x8x1xf32>
    "tpu.trace_start"() <{level = 10 : i32, message = "bqk,bkd->bqd"}> : () -> ()
    %cst_19 = arith.constant dense<0.000000e+00> : vector<1x8x8xf32>
    %61 = tpu.matmul %58, %50, %cst_19 {dimension_numbers = #tpu.dot_dimension_numbers<[2], [1], [1], [2], [0, 0, 0, 1, 1, 2], [0], [0]>} : vector<1x8x8xf32>, vector<1x8x8xf32>, vector<1x8x8xf32> -> vector<1x8x8xf32>
    "tpu.trace_stop"() : () -> ()
    %62 = tpu.reciprocal %60 : vector<1x8x1xf32> -> vector<1x8x1xf32>
    %63 = vector.broadcast %62 : vector<1x8x1xf32> to vector<1x8x8xf32>
    %64 = arith.mulf %61, %63 : vector<1x8x8xf32>
    %65 = vector.extract_strided_slice %8 {offsets = [0, 0, 24], sizes = [1, 8, 8], strides = [1, 1, 1]} : vector<1x8x64xf32> to vector<1x8x8xf32>
    %66 = vector.extract_strided_slice %10 {offsets = [0, 0, 24], sizes = [1, 8, 8], strides = [1, 1, 1]} : vector<1x8x64xf32> to vector<1x8x8xf32>
    %67 = vector.extract_strided_slice %12 {offsets = [0, 0, 24], sizes = [1, 8, 8], strides = [1, 1, 1]} : vector<1x8x64xf32> to vector<1x8x8xf32>
    "tpu.trace_start"() <{level = 10 : i32, message = "bqd,bkd->bqk"}> : () -> ()
    %cst_20 = arith.constant dense<0.000000e+00> : vector<1x8x8xf32>
    %68 = tpu.matmul %65, %66, %cst_20 {dimension_numbers = #tpu.dot_dimension_numbers<[2], [2], [1], [1], [0, 0, 0, 1, 1, 1], [0], [0]>} : vector<1x8x8xf32>, vector<1x8x8xf32>, vector<1x8x8xf32> -> vector<1x8x8xf32>
    "tpu.trace_stop"() : () -> ()
    %69 = vector.shape_cast %13 : vector<8x8xf32> to vector<1x8x8xf32>
    %70 = arith.addf %68, %69 : vector<1x8x8xf32>
    %cst_21 = arith.constant dense<0xFF800000> : vector<1x8xf32>
    %71 = vector.multi_reduction <maximumf>, %70, %cst_21 [2] : vector<1x8x8xf32> to vector<1x8xf32>
    %72 = vector.shape_cast %71 : vector<1x8xf32> to vector<1x8x1xf32>
    %73 = vector.broadcast %72 : vector<1x8x1xf32> to vector<1x8x8xf32>
    %74 = arith.subf %70, %73 : vector<1x8x8xf32>
    %75 = math.exp %74 : vector<1x8x8xf32>
    %cst_22 = arith.constant dense<0.000000e+00> : vector<1x8xf32>
    %76 = vector.multi_reduction <add>, %75, %cst_22 [2] : vector<1x8x8xf32> to vector<1x8xf32>
    %77 = vector.shape_cast %76 : vector<1x8xf32> to vector<1x8x1xf32>
    "tpu.trace_start"() <{level = 10 : i32, message = "bqk,bkd->bqd"}> : () -> ()
    %cst_23 = arith.constant dense<0.000000e+00> : vector<1x8x8xf32>
    %78 = tpu.matmul %75, %67, %cst_23 {dimension_numbers = #tpu.dot_dimension_numbers<[2], [1], [1], [2], [0, 0, 0, 1, 1, 2], [0], [0]>} : vector<1x8x8xf32>, vector<1x8x8xf32>, vector<1x8x8xf32> -> vector<1x8x8xf32>
    "tpu.trace_stop"() : () -> ()
    %79 = tpu.reciprocal %77 : vector<1x8x1xf32> -> vector<1x8x1xf32>
    %80 = vector.broadcast %79 : vector<1x8x1xf32> to vector<1x8x8xf32>
    %81 = arith.mulf %78, %80 : vector<1x8x8xf32>
    %82 = vector.extract_strided_slice %8 {offsets = [0, 0, 32], sizes = [1, 8, 8], strides = [1, 1, 1]} : vector<1x8x64xf32> to vector<1x8x8xf32>
    %83 = vector.extract_strided_slice %10 {offsets = [0, 0, 32], sizes = [1, 8, 8], strides = [1, 1, 1]} : vector<1x8x64xf32> to vector<1x8x8xf32>
    %84 = vector.extract_strided_slice %12 {offsets = [0, 0, 32], sizes = [1, 8, 8], strides = [1, 1, 1]} : vector<1x8x64xf32> to vector<1x8x8xf32>
    "tpu.trace_start"() <{level = 10 : i32, message = "bqd,bkd->bqk"}> : () -> ()
    %cst_24 = arith.constant dense<0.000000e+00> : vector<1x8x8xf32>
    %85 = tpu.matmul %82, %83, %cst_24 {dimension_numbers = #tpu.dot_dimension_numbers<[2], [2], [1], [1], [0, 0, 0, 1, 1, 1], [0], [0]>} : vector<1x8x8xf32>, vector<1x8x8xf32>, vector<1x8x8xf32> -> vector<1x8x8xf32>
    "tpu.trace_stop"() : () -> ()
    %86 = vector.shape_cast %13 : vector<8x8xf32> to vector<1x8x8xf32>
    %87 = arith.addf %85, %86 : vector<1x8x8xf32>
    %cst_25 = arith.constant dense<0xFF800000> : vector<1x8xf32>
    %88 = vector.multi_reduction <maximumf>, %87, %cst_25 [2] : vector<1x8x8xf32> to vector<1x8xf32>
    %89 = vector.shape_cast %88 : vector<1x8xf32> to vector<1x8x1xf32>
    %90 = vector.broadcast %89 : vector<1x8x1xf32> to vector<1x8x8xf32>
    %91 = arith.subf %87, %90 : vector<1x8x8xf32>
    %92 = math.exp %91 : vector<1x8x8xf32>
    %cst_26 = arith.constant dense<0.000000e+00> : vector<1x8xf32>
    %93 = vector.multi_reduction <add>, %92, %cst_26 [2] : vector<1x8x8xf32> to vector<1x8xf32>
    %94 = vector.shape_cast %93 : vector<1x8xf32> to vector<1x8x1xf32>
    "tpu.trace_start"() <{level = 10 : i32, message = "bqk,bkd->bqd"}> : () -> ()
    %cst_27 = arith.constant dense<0.000000e+00> : vector<1x8x8xf32>
    %95 = tpu.matmul %92, %84, %cst_27 {dimension_numbers = #tpu.dot_dimension_numbers<[2], [1], [1], [2], [0, 0, 0, 1, 1, 2], [0], [0]>} : vector<1x8x8xf32>, vector<1x8x8xf32>, vector<1x8x8xf32> -> vector<1x8x8xf32>
    "tpu.trace_stop"() : () -> ()
    %96 = tpu.reciprocal %94 : vector<1x8x1xf32> -> vector<1x8x1xf32>
    %97 = vector.broadcast %96 : vector<1x8x1xf32> to vector<1x8x8xf32>
    %98 = arith.mulf %95, %97 : vector<1x8x8xf32>
    %99 = vector.extract_strided_slice %8 {offsets = [0, 0, 40], sizes = [1, 8, 8], strides = [1, 1, 1]} : vector<1x8x64xf32> to vector<1x8x8xf32>
    %100 = vector.extract_strided_slice %10 {offsets = [0, 0, 40], sizes = [1, 8, 8], strides = [1, 1, 1]} : vector<1x8x64xf32> to vector<1x8x8xf32>
    %101 = vector.extract_strided_slice %12 {offsets = [0, 0, 40], sizes = [1, 8, 8], strides = [1, 1, 1]} : vector<1x8x64xf32> to vector<1x8x8xf32>
    "tpu.trace_start"() <{level = 10 : i32, message = "bqd,bkd->bqk"}> : () -> ()
    %cst_28 = arith.constant dense<0.000000e+00> : vector<1x8x8xf32>
    %102 = tpu.matmul %99, %100, %cst_28 {dimension_numbers = #tpu.dot_dimension_numbers<[2], [2], [1], [1], [0, 0, 0, 1, 1, 1], [0], [0]>} : vector<1x8x8xf32>, vector<1x8x8xf32>, vector<1x8x8xf32> -> vector<1x8x8xf32>
    "tpu.trace_stop"() : () -> ()
    %103 = vector.shape_cast %13 : vector<8x8xf32> to vector<1x8x8xf32>
    %104 = arith.addf %102, %103 : vector<1x8x8xf32>
    %cst_29 = arith.constant dense<0xFF800000> : vector<1x8xf32>
    %105 = vector.multi_reduction <maximumf>, %104, %cst_29 [2] : vector<1x8x8xf32> to vector<1x8xf32>
    %106 = vector.shape_cast %105 : vector<1x8xf32> to vector<1x8x1xf32>
    %107 = vector.broadcast %106 : vector<1x8x1xf32> to vector<1x8x8xf32>
    %108 = arith.subf %104, %107 : vector<1x8x8xf32>
    %109 = math.exp %108 : vector<1x8x8xf32>
    %cst_30 = arith.constant dense<0.000000e+00> : vector<1x8xf32>
    %110 = vector.multi_reduction <add>, %109, %cst_30 [2] : vector<1x8x8xf32> to vector<1x8xf32>
    %111 = vector.shape_cast %110 : vector<1x8xf32> to vector<1x8x1xf32>
    "tpu.trace_start"() <{level = 10 : i32, message = "bqk,bkd->bqd"}> : () -> ()
    %cst_31 = arith.constant dense<0.000000e+00> : vector<1x8x8xf32>
    %112 = tpu.matmul %109, %101, %cst_31 {dimension_numbers = #tpu.dot_dimension_numbers<[2], [1], [1], [2], [0, 0, 0, 1, 1, 2], [0], [0]>} : vector<1x8x8xf32>, vector<1x8x8xf32>, vector<1x8x8xf32> -> vector<1x8x8xf32>
    "tpu.trace_stop"() : () -> ()
    %113 = tpu.reciprocal %111 : vector<1x8x1xf32> -> vector<1x8x1xf32>
    %114 = vector.broadcast %113 : vector<1x8x1xf32> to vector<1x8x8xf32>
    %115 = arith.mulf %112, %114 : vector<1x8x8xf32>
    %116 = vector.extract_strided_slice %8 {offsets = [0, 0, 48], sizes = [1, 8, 8], strides = [1, 1, 1]} : vector<1x8x64xf32> to vector<1x8x8xf32>
    %117 = vector.extract_strided_slice %10 {offsets = [0, 0, 48], sizes = [1, 8, 8], strides = [1, 1, 1]} : vector<1x8x64xf32> to vector<1x8x8xf32>
    %118 = vector.extract_strided_slice %12 {offsets = [0, 0, 48], sizes = [1, 8, 8], strides = [1, 1, 1]} : vector<1x8x64xf32> to vector<1x8x8xf32>
    "tpu.trace_start"() <{level = 10 : i32, message = "bqd,bkd->bqk"}> : () -> ()
    %cst_32 = arith.constant dense<0.000000e+00> : vector<1x8x8xf32>
    %119 = tpu.matmul %116, %117, %cst_32 {dimension_numbers = #tpu.dot_dimension_numbers<[2], [2], [1], [1], [0, 0, 0, 1, 1, 1], [0], [0]>} : vector<1x8x8xf32>, vector<1x8x8xf32>, vector<1x8x8xf32> -> vector<1x8x8xf32>
    "tpu.trace_stop"() : () -> ()
    %120 = vector.shape_cast %13 : vector<8x8xf32> to vector<1x8x8xf32>
    %121 = arith.addf %119, %120 : vector<1x8x8xf32>
    %cst_33 = arith.constant dense<0xFF800000> : vector<1x8xf32>
    %122 = vector.multi_reduction <maximumf>, %121, %cst_33 [2] : vector<1x8x8xf32> to vector<1x8xf32>
    %123 = vector.shape_cast %122 : vector<1x8xf32> to vector<1x8x1xf32>
    %124 = vector.broadcast %123 : vector<1x8x1xf32> to vector<1x8x8xf32>
    %125 = arith.subf %121, %124 : vector<1x8x8xf32>
    %126 = math.exp %125 : vector<1x8x8xf32>
    %cst_34 = arith.constant dense<0.000000e+00> : vector<1x8xf32>
    %127 = vector.multi_reduction <add>, %126, %cst_34 [2] : vector<1x8x8xf32> to vector<1x8xf32>
    %128 = vector.shape_cast %127 : vector<1x8xf32> to vector<1x8x1xf32>
    "tpu.trace_start"() <{level = 10 : i32, message = "bqk,bkd->bqd"}> : () -> ()
    %cst_35 = arith.constant dense<0.000000e+00> : vector<1x8x8xf32>
    %129 = tpu.matmul %126, %118, %cst_35 {dimension_numbers = #tpu.dot_dimension_numbers<[2], [1], [1], [2], [0, 0, 0, 1, 1, 2], [0], [0]>} : vector<1x8x8xf32>, vector<1x8x8xf32>, vector<1x8x8xf32> -> vector<1x8x8xf32>
    "tpu.trace_stop"() : () -> ()
    %130 = tpu.reciprocal %128 : vector<1x8x1xf32> -> vector<1x8x1xf32>
    %131 = vector.broadcast %130 : vector<1x8x1xf32> to vector<1x8x8xf32>
    %132 = arith.mulf %129, %131 : vector<1x8x8xf32>
    %133 = vector.extract_strided_slice %8 {offsets = [0, 0, 56], sizes = [1, 8, 8], strides = [1, 1, 1]} : vector<1x8x64xf32> to vector<1x8x8xf32>
    %134 = vector.extract_strided_slice %10 {offsets = [0, 0, 56], sizes = [1, 8, 8], strides = [1, 1, 1]} : vector<1x8x64xf32> to vector<1x8x8xf32>
    %135 = vector.extract_strided_slice %12 {offsets = [0, 0, 56], sizes = [1, 8, 8], strides = [1, 1, 1]} : vector<1x8x64xf32> to vector<1x8x8xf32>
    "tpu.trace_start"() <{level = 10 : i32, message = "bqd,bkd->bqk"}> : () -> ()
    %cst_36 = arith.constant dense<0.000000e+00> : vector<1x8x8xf32>
    %136 = tpu.matmul %133, %134, %cst_36 {dimension_numbers = #tpu.dot_dimension_numbers<[2], [2], [1], [1], [0, 0, 0, 1, 1, 1], [0], [0]>} : vector<1x8x8xf32>, vector<1x8x8xf32>, vector<1x8x8xf32> -> vector<1x8x8xf32>
    "tpu.trace_stop"() : () -> ()
    %137 = vector.shape_cast %13 : vector<8x8xf32> to vector<1x8x8xf32>
    %138 = arith.addf %136, %137 : vector<1x8x8xf32>
    %cst_37 = arith.constant dense<0xFF800000> : vector<1x8xf32>
    %139 = vector.multi_reduction <maximumf>, %138, %cst_37 [2] : vector<1x8x8xf32> to vector<1x8xf32>
    %140 = vector.shape_cast %139 : vector<1x8xf32> to vector<1x8x1xf32>
    %141 = vector.broadcast %140 : vector<1x8x1xf32> to vector<1x8x8xf32>
    %142 = arith.subf %138, %141 : vector<1x8x8xf32>
    %143 = math.exp %142 : vector<1x8x8xf32>
    %cst_38 = arith.constant dense<0.000000e+00> : vector<1x8xf32>
    %144 = vector.multi_reduction <add>, %143, %cst_38 [2] : vector<1x8x8xf32> to vector<1x8xf32>
    %145 = vector.shape_cast %144 : vector<1x8xf32> to vector<1x8x1xf32>
    "tpu.trace_start"() <{level = 10 : i32, message = "bqk,bkd->bqd"}> : () -> ()
    %cst_39 = arith.constant dense<0.000000e+00> : vector<1x8x8xf32>
    %146 = tpu.matmul %143, %135, %cst_39 {dimension_numbers = #tpu.dot_dimension_numbers<[2], [1], [1], [2], [0, 0, 0, 1, 1, 2], [0], [0]>} : vector<1x8x8xf32>, vector<1x8x8xf32>, vector<1x8x8xf32> -> vector<1x8x8xf32>
    "tpu.trace_stop"() : () -> ()
    %147 = tpu.reciprocal %145 : vector<1x8x1xf32> -> vector<1x8x1xf32>
    %148 = vector.broadcast %147 : vector<1x8x1xf32> to vector<1x8x8xf32>
    %149 = arith.mulf %146, %148 : vector<1x8x8xf32>
    %150 = tpu.concatenate %30, %47, %64, %81, %98, %115, %132, %149 in 2 : vector<1x8x8xf32>, vector<1x8x8xf32>, vector<1x8x8xf32>, vector<1x8x8xf32>, vector<1x8x8xf32>, vector<1x8x8xf32>, vector<1x8x8xf32>, vector<1x8x8xf32> -> vector<1x8x64xf32>
    %151 = vector.shape_cast %150 : vector<1x8x64xf32> to vector<8x64xf32>
    %c0_40 = arith.constant 0 : index
    %c0_41 = arith.constant 0 : index
    %152 = vector.load %arg5[%c0_40, %c0_41] : memref<64x64xf32, #tpu.memory_space<vmem>>, vector<64x64xf32>
    %cst_42 = arith.constant dense<0.000000e+00> : vector<8x64xf32>
    %153 = tpu.matmul %151, %152, %cst_42 {dimension_numbers = #tpu.dot_dimension_numbers<[1], [0], [0], [1], [0, 0, 1, 1], [], []>} : vector<8x64xf32>, vector<64x64xf32>, vector<8x64xf32> -> vector<8x64xf32>
    %c0_43 = arith.constant 0 : index
    %c0_44 = arith.constant 0 : index
    %154 = vector.load %arg6[%c0_43, %c0_44] : memref<1x64xf32, #tpu.memory_space<vmem>>, vector<1x64xf32>
    %155 = vector.broadcast %154 : vector<1x64xf32> to vector<8x64xf32>
    %156 = arith.addf %153, %155 : vector<8x64xf32>
    %157 = arith.addf %1, %156 : vector<8x64xf32>
    %c0_45 = arith.constant 0 : index
    %c0_46 = arith.constant 0 : index
    %158 = vector.load %arg7[%c0_45, %c0_46] : memref<1x64xf32, #tpu.memory_space<vmem>>, vector<1x64xf32>
    %c0_47 = arith.constant 0 : index
    %c0_48 = arith.constant 0 : index
    %159 = vector.load %arg8[%c0_47, %c0_48] : memref<1x64xf32, #tpu.memory_space<vmem>>, vector<1x64xf32>
    %cst_49 = arith.constant dense<0.000000e+00> : vector<8xf32>
    %160 = vector.multi_reduction <add>, %157, %cst_49 [1] : vector<8x64xf32> to vector<8xf32>
    %161 = vector.shape_cast %160 : vector<8xf32> to vector<8x1xf32>
    %cst_50 = arith.constant 6.400000e+01 : f32
    %162 = vector.broadcast %cst_50 : f32 to vector<8x1xf32>
    %163 = arith.divf %161, %162 : vector<8x1xf32>
    %164 = vector.broadcast %163 : vector<8x1xf32> to vector<8x64xf32>
    %165 = arith.subf %157, %164 : vector<8x64xf32>
    %166 = arith.mulf %165, %165 : vector<8x64xf32>
    %cst_51 = arith.constant dense<0.000000e+00> : vector<8xf32>
    %167 = vector.multi_reduction <add>, %166, %cst_51 [1] : vector<8x64xf32> to vector<8xf32>
    %168 = vector.shape_cast %167 : vector<8xf32> to vector<8x1xf32>
    %cst_52 = arith.constant 6.400000e+01 : f32
    %169 = vector.broadcast %cst_52 : f32 to vector<8x1xf32>
    %170 = arith.divf %168, %169 : vector<8x1xf32>
    %171 = vector.broadcast %163 : vector<8x1xf32> to vector<8x64xf32>
    %172 = arith.subf %157, %171 : vector<8x64xf32>
    %cst_53 = arith.constant 9.99999974E-6 : f32
    %173 = vector.broadcast %cst_53 : f32 to vector<8x1xf32>
    %174 = arith.addf %170, %173 : vector<8x1xf32>
    %175 = math.rsqrt %174 : vector<8x1xf32>
    %176 = vector.broadcast %175 : vector<8x1xf32> to vector<8x64xf32>
    %177 = arith.mulf %172, %176 : vector<8x64xf32>
    %178 = vector.broadcast %158 : vector<1x64xf32> to vector<8x64xf32>
    %179 = arith.mulf %177, %178 : vector<8x64xf32>
    %180 = vector.broadcast %159 : vector<1x64xf32> to vector<8x64xf32>
    %181 = arith.addf %179, %180 : vector<8x64xf32>
    %c0_54 = arith.constant 0 : index
    %c0_55 = arith.constant 0 : index
    %182 = vector.load %arg9[%c0_54, %c0_55] : memref<64x256xf32, #tpu.memory_space<vmem>>, vector<64x256xf32>
    %cst_56 = arith.constant dense<0.000000e+00> : vector<8x256xf32>
    %183 = tpu.matmul %181, %182, %cst_56 {dimension_numbers = #tpu.dot_dimension_numbers<[1], [0], [0], [1], [0, 0, 1, 1], [], []>} : vector<8x64xf32>, vector<64x256xf32>, vector<8x256xf32> -> vector<8x256xf32>
    %c0_57 = arith.constant 0 : index
    %c0_58 = arith.constant 0 : index
    %184 = vector.load %arg10[%c0_57, %c0_58] : memref<1x256xf32, #tpu.memory_space<vmem>>, vector<1x256xf32>
    %185 = vector.broadcast %184 : vector<1x256xf32> to vector<8x256xf32>
    %186 = arith.addf %183, %185 : vector<8x256xf32>
    %cst_59 = arith.constant 0.000000e+00 : f32
    %187 = vector.broadcast %cst_59 : f32 to vector<8x256xf32>
    %188 = arith.maximumf %186, %187 : vector<8x256xf32>
    %c0_60 = arith.constant 0 : index
    %c0_61 = arith.constant 0 : index
    %189 = vector.load %arg11[%c0_60, %c0_61] : memref<256x64xf32, #tpu.memory_space<vmem>>, vector<256x64xf32>
    %cst_62 = arith.constant dense<0.000000e+00> : vector<8x64xf32>
    %190 = tpu.matmul %188, %189, %cst_62 {dimension_numbers = #tpu.dot_dimension_numbers<[1], [0], [0], [1], [0, 0, 1, 1], [], []>} : vector<8x256xf32>, vector<256x64xf32>, vector<8x64xf32> -> vector<8x64xf32>
    %c0_63 = arith.constant 0 : index
    %c0_64 = arith.constant 0 : index
    %191 = vector.load %arg12[%c0_63, %c0_64] : memref<1x64xf32, #tpu.memory_space<vmem>>, vector<1x64xf32>
    %192 = vector.broadcast %191 : vector<1x64xf32> to vector<8x64xf32>
    %193 = arith.addf %190, %192 : vector<8x64xf32>
    %194 = arith.addf %193, %193 : vector<8x64xf32>
    %c0_65 = arith.constant 0 : index
    %c0_66 = arith.constant 0 : index
    %195 = vector.load %arg13[%c0_65, %c0_66] : memref<1x64xf32, #tpu.memory_space<vmem>>, vector<1x64xf32>
    %c0_67 = arith.constant 0 : index
    %c0_68 = arith.constant 0 : index
    %196 = vector.load %arg14[%c0_67, %c0_68] : memref<1x64xf32, #tpu.memory_space<vmem>>, vector<1x64xf32>
    %cst_69 = arith.constant dense<0.000000e+00> : vector<8xf32>
    %197 = vector.multi_reduction <add>, %194, %cst_69 [1] : vector<8x64xf32> to vector<8xf32>
    %198 = vector.shape_cast %197 : vector<8xf32> to vector<8x1xf32>
    %cst_70 = arith.constant 6.400000e+01 : f32
    %199 = vector.broadcast %cst_70 : f32 to vector<8x1xf32>
    %200 = arith.divf %198, %199 : vector<8x1xf32>
    %201 = vector.broadcast %200 : vector<8x1xf32> to vector<8x64xf32>
    %202 = arith.subf %194, %201 : vector<8x64xf32>
    %203 = arith.mulf %202, %202 : vector<8x64xf32>
    %cst_71 = arith.constant dense<0.000000e+00> : vector<8xf32>
    %204 = vector.multi_reduction <add>, %203, %cst_71 [1] : vector<8x64xf32> to vector<8xf32>
    %205 = vector.shape_cast %204 : vector<8xf32> to vector<8x1xf32>
    %cst_72 = arith.constant 6.400000e+01 : f32
    %206 = vector.broadcast %cst_72 : f32 to vector<8x1xf32>
    %207 = arith.divf %205, %206 : vector<8x1xf32>
    %208 = vector.broadcast %200 : vector<8x1xf32> to vector<8x64xf32>
    %209 = arith.subf %194, %208 : vector<8x64xf32>
    %cst_73 = arith.constant 9.99999974E-6 : f32
    %210 = vector.broadcast %cst_73 : f32 to vector<8x1xf32>
    %211 = arith.addf %207, %210 : vector<8x1xf32>
    %212 = math.rsqrt %211 : vector<8x1xf32>
    %213 = vector.broadcast %212 : vector<8x1xf32> to vector<8x64xf32>
    %214 = arith.mulf %209, %213 : vector<8x64xf32>
    %215 = vector.broadcast %195 : vector<1x64xf32> to vector<8x64xf32>
    %216 = arith.mulf %214, %215 : vector<8x64xf32>
    %217 = vector.broadcast %196 : vector<1x64xf32> to vector<8x64xf32>
    %218 = arith.addf %216, %217 : vector<8x64xf32>
    %219 = vector.shape_cast %218 : vector<8x64xf32> to vector<1x8x64xf32>
    %c0_74 = arith.constant 0 : index
    %c0_75 = arith.constant 0 : index
    %c0_76 = arith.constant 0 : index
    %220 = vector.load %arg15[%c0_74, %c0_75, %c0_76] : memref<1x8x64xf32, #tpu.memory_space<vmem>>, vector<1x8x64xf32>
    tpu.vector_store %arg15[%c0_74, %c0_75, %c0_76], %219 {strides = array<i32>} : memref<1x8x64xf32, #tpu.memory_space<vmem>>, vector<1x8x64xf32>,
    return
  }
  func.func @transform_0(%arg0: i32) -> (i32, i32, i32) {
    %c0_i32 = arith.constant 0 : i32
    %c0_i32_0 = arith.constant 0 : i32
    %c0_i32_1 = arith.constant 0 : i32
    return %arg0, %c0_i32, %c0_i32_0 : i32, i32, i32
  }
  func.func @transform_1(%arg0: i32) -> (i32, i32) {
    %c0_i32 = arith.constant 0 : i32
    %c0_i32_0 = arith.constant 0 : i32
    %c0_i32_1 = arith.constant 0 : i32
    return %c0_i32, %c0_i32_0 : i32, i32
  }
  func.func @transform_2(%arg0: i32) -> (i32, i32) {
    %c0_i32 = arith.constant 0 : i32
    %c0_i32_0 = arith.constant 0 : i32
    %c0_i32_1 = arith.constant 0 : i32
    return %c0_i32, %c0_i32_0 : i32, i32
  }
  func.func @transform_3(%arg0: i32) -> (i32, i32) {
    %c0_i32 = arith.constant 0 : i32
    %c0_i32_0 = arith.constant 0 : i32
    %c0_i32_1 = arith.constant 0 : i32
    return %c0_i32, %c0_i32_0 : i32, i32
  }
  func.func @transform_4(%arg0: i32) -> (i32, i32) {
    %c0_i32 = arith.constant 0 : i32
    %c0_i32_0 = arith.constant 0 : i32
    %c0_i32_1 = arith.constant 0 : i32
    return %c0_i32, %c0_i32_0 : i32, i32
  }
  func.func @transform_5(%arg0: i32) -> (i32, i32) {
    %c0_i32 = arith.constant 0 : i32
    %c0_i32_0 = arith.constant 0 : i32
    %c0_i32_1 = arith.constant 0 : i32
    return %c0_i32, %c0_i32_0 : i32, i32
  }
  func.func @transform_6(%arg0: i32) -> (i32, i32) {
    %c0_i32 = arith.constant 0 : i32
    %c0_i32_0 = arith.constant 0 : i32
    %c0_i32_1 = arith.constant 0 : i32
    return %c0_i32, %c0_i32_0 : i32, i32
  }
  func.func @transform_7(%arg0: i32) -> (i32, i32) {
    %c0_i32 = arith.constant 0 : i32
    %c0_i32_0 = arith.constant 0 : i32
    %c0_i32_1 = arith.constant 0 : i32
    return %c0_i32, %c0_i32_0 : i32, i32
  }
  func.func @transform_8(%arg0: i32) -> (i32, i32) {
    %c0_i32 = arith.constant 0 : i32
    %c0_i32_0 = arith.constant 0 : i32
    %c0_i32_1 = arith.constant 0 : i32
    return %c0_i32, %c0_i32_0 : i32, i32
  }
  func.func @transform_9(%arg0: i32) -> (i32, i32) {
    %c0_i32 = arith.constant 0 : i32
    %c0_i32_0 = arith.constant 0 : i32
    %c0_i32_1 = arith.constant 0 : i32
    return %c0_i32, %c0_i32_0 : i32, i32
  }
  func.func @transform_10(%arg0: i32) -> (i32, i32) {
    %c0_i32 = arith.constant 0 : i32
    %c0_i32_0 = arith.constant 0 : i32
    %c0_i32_1 = arith.constant 0 : i32
    return %c0_i32, %c0_i32_0 : i32, i32
  }
  func.func @transform_11(%arg0: i32) -> (i32, i32) {
    %c0_i32 = arith.constant 0 : i32
    %c0_i32_0 = arith.constant 0 : i32
    %c0_i32_1 = arith.constant 0 : i32
    return %c0_i32, %c0_i32_0 : i32, i32
  }
  func.func @transform_12(%arg0: i32) -> (i32, i32) {
    %c0_i32 = arith.constant 0 : i32
    %c0_i32_0 = arith.constant 0 : i32
    %c0_i32_1 = arith.constant 0 : i32
    return %c0_i32, %c0_i32_0 : i32, i32
  }
  func.func @transform_13(%arg0: i32) -> (i32, i32) {
    %c0_i32 = arith.constant 0 : i32
    %c0_i32_0 = arith.constant 0 : i32
    %c0_i32_1 = arith.constant 0 : i32
    return %c0_i32, %c0_i32_0 : i32, i32
  }
  func.func @transform_14(%arg0: i32) -> (i32, i32, i32) {
    %c0_i32 = arith.constant 0 : i32
    %c0_i32_0 = arith.constant 0 : i32
    %c0_i32_1 = arith.constant 0 : i32
    return %arg0, %c0_i32, %c0_i32_0 : i32, i32, i32
  }
}

</mosaic_0001>

<bundles_post_ra>
// kernel: tpu_custom_call.1
= control target key start
LH: loop header
LB: loop body
LE: loop exit
PB: predicated region body
PF: predicated region fallthrough
CT: control target
= control target key end

     0   :  { %s3379_s0 = inlined_call_operand.vmem [shape: f32[2,8,64], index: 0, kind: input, shape index: {}]   ;;  %s3380_s1 = inlined_call_operand.vmem [shape: f32[8,8], index: 1, kind: input, shape index: {}]   ;;  %s3381_s2 = inlined_call_operand.vmem [shape: f32[64,192], index: 2, kind: input, shape index: {}]   ;;  %s3382_s3 = inlined_call_operand.vmem [shape: f32[1,192], index: 3, kind: input, shape index: {}]   ;;  %s3383_s4 = inlined_call_operand.vmem [shape: f32[64,64], index: 4, kind: input, shape index: {}]   ;;  %s3384_s5 = inlined_call_operand.vmem [shape: f32[1,64], index: 5, kind: input, shape index: {}]   ;;  %s3385_s6 = inlined_call_operand.vmem [shape: f32[1,64], index: 6, kind: input, shape index: {}]   ;;  %s3386_s7 = inlined_call_operand.vmem [shape: f32[1,64], index: 7, kind: input, shape index: {}]   ;;  %s3387_s8 = inlined_call_operand.vmem [shape: f32[64,256], index: 8, kind: input, shape index: {}]   ;;  %s3388_s9 = inlined_call_operand.vmem [shape: f32[1,256], index: 9, kind: input, shape index: {}]   ;;  %s3389_s10 = inlined_call_operand.vmem [shape: f32[256,64], index: 10, kind: input, shape index: {}]   ;;  %s3390_s11 = inlined_call_operand.vmem [shape: f32[1,64], index: 11, kind: input, shape index: {}]   ;;  %s3391_s12 = inlined_call_operand.vmem [shape: f32[1,64], index: 12, kind: input, shape index: {}]   ;;  %s3392_s13 = inlined_call_operand.vmem [shape: f32[1,64], index: 13, kind: input, shape index: {}]   ;;  %s3393_s14 = inlined_call_operand.hbm [shape: f32[2,8,64], index: 14, kind: output, shape index: {}]  }
   0x1   :  { %3403 = sst [smem:[#allocation10_spill]] %s3379_s0 }
   0x2   :  { %19 = vsyncpa [#allocation3], 0 }
   0x3   :  { %21 = vsyncpa [#allocation3 + $0x1], 0  ;;  %s2828_s29 = smov 0   ;;  %s2830_s30 = smov 0  }
   0x4   :  { %s2832_s15 = smov 0   ;;  %s2834_s16 = smov 0  }
   0x5 LB: > { %3404 = sst [smem:[#allocation5_spill]] %s2721_s29  ;;  %s2849_s17 = sadd.s32 4294967295, %s2733_s16   ;;  %s2733_s16 = sphi %s2834_s16, %s3418_s16   ;;  %s2729_s15 = sphi %s2832_s15, %s3420_s15   ;;  %s2725_s30 = sphi %s2830_s30, %s3422_s30   ;;  %s2721_s29 = sphi %s2828_s29, %s3421_s29  }
   0x6   : > { %3405 = sst [smem:[#allocation6_spill]] %s2729_s15  ;;  %s2363_s18 = sadd.s32 4294967294, %s2733_s16  }
   0x7   : > { %s2853_s19 = sadd.s32 1, %s2733_s16   ;;  %s333_s20 = sadd.s32 1, %s2729_s15 }
   0x8   : > { %3406 = sst [smem:[#allocation7_spill]] %s2853_s19  ;;  %s330_s21 = ssub.s32 %s2733_s16, %s2853_s19 }
   0x9   : > { %p343_p0 = scmp.ne.s32.totalorder %s2729_s15, %s2725_s30  ;;  %p331_p1 = scmp.eq.s32.totalorder %s330_s21, 0 }
   0xa   : > { %p344_p2 = scmp.eq.s32.totalorder %s2849_s17, 1  ;;  %p349_p3 = scmp.ne.s32.totalorder %s2725_s30, %s2721_s29 }
   0xb   : > { %p350_p4 = scmp.eq.s32.totalorder %s2363_s18, 1  ;;  %p2366_p7 = scmp.ge.s32.totalorder %s2733_s16, 1 }
   0xc   : > { %s2864_s22 = scalar_select %p331_p1, %s2729_s15, %s333_s20  }
   0xd   : > { %p2866_p5 = por %p344_p2, %p343_p0  ;;  %p2870_p6 = por %p350_p4, %p349_p3 }
   0xe   : > { %3407 = sst [smem:[#allocation8_spill]] %s2864_s22  ;;  %p414_p8 = scmp.lt.s32.totalorder %s2733_s16, 3 }
   0xf   : > { %s3409_s24 = scalar_select %p2870_p6, 1, 0 }
  0x10   : > { %p415_p9 = pnand %p2366_p7, %p414_p8 }
  0x11   : > { %3410 = sst [smem:[#allocation9_spill]] %s3409_s24  ;;  %p459_p10 = scmp.lt.s32.totalorder (!%p415_p9), %s2849_s17, 1 }
  0x12   : > { %418 = sbr.rel (%p415_p9) target bundleno = 2623 (0xa3f), region = 76  ;;  %s3411_s0 = sld [smem:[#allocation10_spill]] (!%p415_p9) }
  0x13   : > { %s3399_s21 = smov (!%p415_p9), 56   ;;  %s2738_s25 = smov (!%p415_p9), 64  }
  0x14   : > { %s2739_s26 = smov (!%p415_p9), 120   ;;  %s3400_s19 = smov (!%p415_p9), 48  }
  0x15   : > { %s2741_s27 = smov (!%p415_p9), 112   ;;  %s3402_s18 = smov (!%p415_p9), 32  }
  0x16   : > { %s2745_s24 = smov (!%p415_p9), 96   ;;  %s2746_s15 = smov (!%p415_p9), 24  }
  0x17   : > { %v479_v0 = vld [vmem:[%s3381_s2 + $0x78] sm:$0xff]  ;;  %v478_v1 = vld [vmem:[%s3381_s2 + $0x70] sm:$0xff]  ;;  %v477_v2 = vld [vmem:[%s3381_s2 + $0x68] sm:$0xff]  ;;  %v2735_v4 = vmov 0.0   ;;  %s460_s22 = scalar_select %p459_p10, %s2849_s17, 1  ;;  %vm492_vm0 = vcmask 523264   ;;  %v482_v18 = vlaneseq }
  0x18   : > { %512 = vmatprep.subr.mxu1 %v479_v0  ;;  %v476_v3 = vld [vmem:[%s3381_s2 + $0x60] sm:$0xff]  ;;  %560 = vmatprep.mubr.f32.mxu1 %v2735_v4  ;;  %v475_v5 = vld [vmem:[%s3381_s2 + $0x58] sm:$0xff]  ;;  %v474_v6 = vld [vmem:[%s3381_s2 + $0x50] sm:$0xff]  ;;  %vm2736_vm1 = vmmov 0   ;;  %s2747_s29 = smov 16   ;;  %vm571_vm2 = vcmask 64512  }
  0x19   : > { %513 = vmatpush1.msra.mxu1 %v478_v1  ;;  %2502 = vmatprep.subr.mxu0 %v2735_v4  ;;  %v473_v7 = vld [vmem:[%s3381_s2 + $0x48] sm:$0xff]  ;;  %v472_v8 = vld [vmem:[%s3381_s2 + $0x40] sm:$0xff]  ;;  %v471_v9 = vld [vmem:[%s3381_s2 + $0x38] sm:$0xff]  ;;  %s2368_s20 = sshll.u32 %s460_s22, 3  ;;  %v2936_v19 = vshrl.u32 %v482_v18, 7  ;;  %s2743_s22 = smov 104  }
  0x1a   : > { %514 = vmatprep.subr.mxu1 %v477_v2  ;;  %v470_v10 = vld [vmem:[%s3381_s2 + $0x30] sm:$0xff]  ;;  %v469_v11 = vld [vmem:[%s3381_s2 + $0x28] sm:$0xff]  ;;  %v468_v12 = vld [vmem:[%s3381_s2 + $0x20] sm:$0xff]  ;;  %s462_s28 = scalar_lea.vmem %s3411_s0, %s2368_s20  ;;  %2504 = vmatprep.mubr.msk.f32.mxu0 %vm2736_vm1, %v2735_v4  ;;  %s2748_s20 = smov 80   ;;  %vm1915_vm3 = vcmask 130048   ;;  %vm1917_vm4 = vcmask 195584  }
  0x1b   : > { %515 = vmatpush1.msra.mxu1 %v476_v3  ;;  %v467_v13 = vld [vmem:[%s3381_s2 + $0x18] sm:$0xff]  ;;  %v466_v14 = vld [vmem:[%s3381_s2 + $0x10] sm:$0xff]  ;;  %v465_v15 = vld [vmem:[%s3381_s2 + $0x8] sm:$0xff]  ;;  %v484_v20 = vsub.s32 0, %v2936_v19  ;;  %v488_v25 = vsub.s32 1, %v2936_v19  ;;  %vm1919_vm5 = vcmask 261120  }
  0x1c   : > { %516 = vmatprep.subr.mxu1 %v475_v5  ;;  %v464_v16 = vld [vmem:[%s3381_s2] sm:$0xff]  ;;  %vm1921_vm6 = vcmask 326656   ;;  %vm1923_vm7 = vcmask 392192   ;;  %vm1925_vm8 = vcmask 457728  }
  0x1d   : > { %517 = vmatpush1.msra.mxu1 %v474_v6  ;;  %v2931_v17 = vld [vmem:[%s462_s28] sm:$0xff]  ;;  %s3401_s28 = smov 40  }
  0x1e   : > { %518 = vmatprep.subr.mxu1 %v473_v7  ;;  %v480_v21 = vld [vmem:[%s3382_s3] sm:$0x3] }
  0x1f   : > { %519 = vmatpush1.msra.mxu1 %v472_v8  ;;  %v485_v22 = vrot.slane %v480_v21, %v484_v20  ;;  %v489_v26 = vrot.slane %v480_v21, %v488_v25  ;;  %v3014_v39 = vld [vmem:[%s3380_s1] sm:$0xff] }
  0x20   : > { %520 = vmatprep.subr.mxu1 %v471_v9 }
  0x21   : > { %521 = vmatpush1.msra.mxu1 %v470_v10 }
  0x22   : > { %522 = vmatprep.subr.mxu1 %v469_v11 }
  0x23   : > { %523 = vmatpush1.msra.mxu1 %v468_v12 }
  0x24   : > { %524 = vmatprep.subr.mxu1 %v467_v13 }
  0x25   : > { %525 = vmatpush1.msra.mxu1 %v466_v14 }
  0x26   : > { %526 = vmatprep.subr.mxu1 %v465_v15 }
  0x27   : > { %527 = vmatpush1.msra.mxu1 %v464_v16 }
  0x28   : > { %2369 = vmatmul.mubr.msk.f32.vlgmr.msra.gmra.mxu1 %vm492_vm0, %v2931_v17  ;;  %2482 = vmatprep.subr.mxu1 %v2735_v4 }
  0x29   : > { %2484 = vmatprep.mubr.msk.f32.mxu1 %vm2736_vm1, %v2735_v4 }
  0xe8   : > { %v562_v23 = vpop.f32.mrf.mxu1 }
  0xe9   : > { %v2948_v24 = vadd.f32 %v562_v23, %v485_v22 }
  0xea   : > { %v564_v27 = vpop.f32.mrf.mxu1 }
  0xeb   : > { %732 = vrot.lane.b32.xlu1 %v2948_v24, %s3399_s21  ;;  %569 = vrot.lane.b32.xlu0 %v2948_v24, %s2738_s25  ;;  %s2749_s25 = smov 8   ;;  %s2750_s21 = smov 72   ;;  %v2984_v30 = vadd.f32 %v564_v27, %v489_v26 }
  0xef   : > { %730 = vrot.lane.b32.xlu1 %v2948_v24, %s2739_s26 }
  0xf3   : > { %898 = vrot.lane.b32.xlu1 %v2948_v24, %s3400_s19  ;;  %s2403_s19 = sshll.u32 %s2849_s17, 7 }
  0xf7   : > { %896 = vrot.lane.b32.xlu1 %v2948_v24, %s2741_s27 }
  0xfb   : > { %1063 = vrot.lane.b32.xlu1 %v2948_v24, %s3401_s28 }
  0xff   : > { %1061 = vrot.lane.b32.xlu1 %v2948_v24, %s2743_s22 }
 0x103   : > { %1228 = vrot.lane.b32.xlu1 %v2948_v24, %s3402_s18  ;;  %s2751_s18 = smov 88  }
 0x107   : > { %1226 = vrot.lane.b32.xlu1 %v2948_v24, %s2745_s24 }
 0x10b   : > { %1393 = vrot.lane.b32.xlu1 %v2948_v24, %s2746_s15 }
 0x10f   : > { %1558 = vrot.lane.b32.xlu1 %v2948_v24, %s2747_s29 }
 0x113   : > { %1556 = vrot.lane.b32.xlu1 %v2948_v24, %s2748_s20 }
 0x117   : > { %1723 = vrot.lane.b32.xlu1 %v2948_v24, %s2749_s25 }
 0x11b   : > { %1721 = vrot.lane.b32.xlu1 %v2948_v24, %s2750_s21 }
 0x15d   : > { %v2980_v28 = vpop.permute.xlu1 %732  ;;  %v570_v29 = vpop.permute.xlu0 %569 }
 0x15e   : > { %2483 = vmatpush3.xpose.msk.msra.mxu1 %vm571_vm2, %v570_v29 }
 0x15f   : > { %2487 = vmatprep.subr.mxu1 %v2735_v4 }
 0x161   : > { %v2986_v31 = vpop.permute.xlu1 %730  ;;  %2485 = vmatmul.mubr.msk.f32.vlgmr.msra.gmra.mxu1 %vm571_vm2, %v2948_v24 }
 0x162   : > { %2488 = vmatpush3.msra.mxu1 %v2984_v30  ;;  %2489 = vmatprep.mubr.msk.f32.mxu1 %vm2736_vm1, %v2735_v4 }
 0x163   : > { %2492 = vmatprep.subr.mxu1 %v2735_v4 }
 0x165   : > { %v899_v32 = vpop.permute.xlu1 %898 }
 0x166   : > { %2503 = vmatpush3.xpose.msk.msra.mxu0 %vm571_vm2, %v899_v32 }
 0x167   : > { %2512 = vmatprep.subr.mxu0 %v2735_v4 }
 0x169   : > { %v897_v33 = vpop.permute.xlu1 %896 }
 0x16a   : > { %2505 = vmatmul.mubr.msk.f32.vlgmr.msra.gmra.mxu0 %vm571_vm2, %v897_v33 }
 0x16b   : > { %2514 = vmatprep.mubr.msk.f32.mxu0 %vm2736_vm1, %v2735_v4 }
 0x16d   : > { %v1064_v34 = vpop.permute.xlu1 %1063 }
 0x16e   : > { %2513 = vmatpush3.xpose.msk.msra.mxu0 %vm571_vm2, %v1064_v34 }
 0x16f   : > { %2522 = vmatprep.subr.mxu0 %v2735_v4 }
 0x171   : > { %v1062_v35 = vpop.permute.xlu1 %1061 }
 0x172   : > { %2515 = vmatmul.mubr.msk.f32.vlgmr.msra.gmra.mxu0 %vm571_vm2, %v1062_v35 }
 0x173   : > { %2524 = vmatprep.mubr.msk.f32.mxu0 %vm2736_vm1, %v2735_v4 }
 0x175   : > { %v1229_v36 = vpop.permute.xlu1 %1228 }
 0x176   : > { %2523 = vmatpush3.xpose.msk.msra.mxu0 %vm571_vm2, %v1229_v36 }
 0x177   : > { %2532 = vmatprep.subr.mxu0 %v2735_v4 }
 0x179   : > { %v1227_v37 = vpop.permute.xlu1 %1226 }
 0x17a   : > { %2525 = vmatmul.mubr.msk.f32.vlgmr.msra.gmra.mxu0 %vm571_vm2, %v1227_v37 }
 0x17b   : > { %2534 = vmatprep.mubr.msk.f32.mxu0 %vm2736_vm1, %v2735_v4 }
 0x17d   : > { %v1394_v38 = vpop.permute.xlu1 %1393 }
 0x17e   : > { %2533 = vmatpush3.xpose.msk.msra.mxu0 %vm571_vm2, %v1394_v38 }
 0x17f   : > { %2542 = vmatprep.subr.mxu0 %v2735_v4 }
 0x181   : > { %v1559_v56 = vpop.permute.xlu1 %1558 }
 0x185   : > { %v1557_v57 = vpop.permute.xlu1 %1556 }
 0x189   : > { %v1724_v62 = vpop.permute.xlu1 %1723 }
 0x18d   : > { %v1722_v63 = vpop.permute.xlu1 %1721 }
 0x221   : > { %v642_v40 = vpop.f32.mrf.mxu1 }
 0x222   : > { %v643_v41 = vadd.f32 %v642_v40, %v3014_v39 }
 0x223   : > { %v2486_v42 = vpop.f32.mrf.mxu1 }
 0x224   : > { %v646_v43 = vsel %vm571_vm2, %v643_v41, -inf }
 0x225   : > { %647 = vmax.xlane.f32.xlu0 %v646_v43 }
 0x22a   : > { %v970_v44 = vpop.f32.mrf.mxu0 }
 0x22b   : > { %v3026_v52 = vadd.f32 %v970_v44, %v3014_v39 }
 0x22c   : > { %v2506_v45 = vpop.f32.mrf.mxu0 }
 0x22d   : > { %v974_v54 = vsel %vm571_vm2, %v3026_v52, -inf }
 0x232   : > { %v1135_v46 = vpop.f32.mrf.mxu0 }
 0x233   : > { %v3029_v53 = vadd.f32 %v1135_v46, %v3014_v39 }
 0x234   : > { %v2516_v47 = vpop.f32.mrf.mxu0 }
 0x235   : > { %v1139_v55 = vsel %vm571_vm2, %v3029_v53, -inf }
 0x23a   : > { %v1300_v48 = vpop.f32.mrf.mxu0 }
 0x23b   : > { %v3019_v49 = vadd.f32 %v1300_v48, %v3014_v39  ;;  %1391 = vrot.lane.b32.xlu0 %v2948_v24, %s2751_s18 }
 0x23c   : > { %v2526_v50 = vpop.f32.mrf.mxu0 }
 0x23d   : > { %v1304_v51 = vsel %vm571_vm2, %v3019_v49, -inf }
 0x23e   : > { %1305 = vmax.xlane.f32.xlu1 %v1304_v51 }
 0x25a   : > { %975 = vmax.xlane.f32.xlu0 %v974_v54 }
 0x25e   : > { %1140 = vmax.xlane.f32.xlu0 %v1139_v55 }
 0x2ae   : > { %v648_v58 = vpop.xlane.xlu0 %647 }
 0x2af   : > { %v649_v59 = vsub.f32 %v643_v41, %v648_v58 }
 0x2b1   : > { %v650_v60 = vmul.f32 1.442695, %v649_v59 }
 0x2b2   : > { %v1392_v61 = vpop.permute.xlu0 %1391 }
 0x2b3   : > { %2637 = vpow2.f32 %v650_v60  ;;  %2535 = vmatmul.mubr.msk.f32.vlgmr.msra.gmra.mxu0 %vm571_vm2, %v1392_v61 }
 0x2b4   : > { %2543 = vmatpush3.xpose.msk.msra.mxu0 %vm571_vm2, %v1559_v56  ;;  %2544 = vmatprep.mubr.msk.f32.mxu0 %vm2736_vm1, %v2735_v4 }
 0x2b5   : > { %2552 = vmatprep.subr.mxu0 %v2735_v4 }
 0x2b7   : > { %2545 = vmatmul.mubr.msk.f32.vlgmr.msra.gmra.mxu0 %vm571_vm2, %v1557_v57 }
 0x2b8   : > { %2553 = vmatpush3.xpose.msk.msra.mxu0 %vm571_vm2, %v1724_v62  ;;  %2554 = vmatprep.mubr.msk.f32.mxu0 %vm2736_vm1, %v2735_v4 }
 0x2b9   : > { %2562 = vmatprep.subr.mxu0 %v2735_v4 }
 0x2bb   : > { %2555 = vmatmul.mubr.msk.f32.vlgmr.msra.gmra.mxu0 %vm571_vm2, %v1722_v63 }
 0x2bc   : > { %2578 = vmatprep.mubr.msk.f32.mxu0 %vm2736_vm1, %v2735_v4 }
 0x2c0   : > { %v3048_v0 = vpop.eup %2637 }
 0x2c1   : > { %2490 = vmatmul.mubr.msk.f32.vlgmr.msra.gmra.mxu1 %vm571_vm2, %v3048_v0  ;;  %v652_v54 = vsel %vm571_vm2, %v3048_v0, 0.0 }
 0x2c2   : > { %2493 = vmatpush3.xpose.msk.msra.mxu1 %vm571_vm2, %v2980_v28  ;;  %2494 = vmatprep.mubr.msk.f32.mxu1 %vm2736_vm1, %v2735_v4 }
 0x2c3   : > { %2497 = vmatprep.subr.mxu1 %v2735_v4 }
 0x2c5   : > { %2495 = vmatmul.mubr.msk.f32.vlgmr.msra.gmra.mxu1 %vm571_vm2, %v2986_v31 }
 0x2c6   : > { %2499 = vmatprep.mubr.msk.f32.mxu1 %vm2736_vm1, %v2735_v4 }
 0x2c7   : > { %v1306_v27 = vpop.xlane.xlu1 %1305 }
 0x2c8   : > { %v1307_v28 = vsub.f32 %v3019_v49, %v1306_v27  ;;  %v1930_v27 = vld [vmem:[%s3383_s4 + $0x18] sm:$0xff] }
 0x2ca   : > { %v1308_v31 = vmul.f32 1.442695, %v1307_v28 }
 0x2e3   : > { %v976_v23 = vpop.xlane.xlu0 %975 }
 0x2e4   : > { %v977_v33 = vsub.f32 %v3026_v52, %v976_v23 }
 0x2e6   : > { %v978_v36 = vmul.f32 1.442695, %v977_v33 }
 0x2e7   : > { %v1141_v24 = vpop.xlane.xlu0 %1140 }
 0x2e8   : > { %v1142_v26 = vsub.f32 %v3029_v53, %v1141_v24 }
 0x2ea   : > { %v1143_v29 = vmul.f32 1.442695, %v1142_v26  ;;  %v1931_v26 = vld [vmem:[%s3383_s4 + $0x20] sm:$0xff] }
 0x2ec   : > { %2639 = vpow2.f32 %v1143_v29 }
 0x2ed   : > { %2641 = vpow2.f32 %v1308_v31 }
 0x2ee   : > { %2643 = vpow2.f32 %v978_v36 }
 0x2f9   : > { %v2640_v32 = vpop.eup %2639 }
 0x2fa   : > { %v1145_v34 = vsel %vm571_vm2, %v2640_v32, 0.0  ;;  %v2642_v35 = vpop.eup %2641 }
 0x2fb   : > { %v1310_v37 = vsel %vm571_vm2, %v2642_v35, 0.0  ;;  %v2644_v38 = vpop.eup %2643 }
 0x373   : > { %v1465_v1 = vpop.f32.mrf.mxu0 }
 0x374   : > { %v1466_v2 = vadd.f32 %v1465_v1, %v3014_v39 }
 0x375   : > { %v2536_v3 = vpop.f32.mrf.mxu0 }
 0x376   : > { %v1469_v5 = vsel %vm571_vm2, %v1466_v2, -inf }
 0x377   : > { %1470 = vmax.xlane.f32.xlu0 %v1469_v5  ;;  %v1630_v6 = vpop.f32.mrf.mxu0 }
 0x378   : > { %v1631_v7 = vadd.f32 %v1630_v6, %v3014_v39 }
 0x379   : > { %v2546_v8 = vpop.f32.mrf.mxu0 }
 0x37a   : > { %v1634_v9 = vsel %vm571_vm2, %v1631_v7, -inf  ;;  %v1934_v8 = vld [vmem:[%s3383_s4 + $0x38] sm:$0xff] }
 0x37b   : > { %1635 = vmax.xlane.f32.xlu1 %v1634_v9  ;;  %v1795_v10 = vpop.f32.mrf.mxu0  ;;  %2563 = vmatpush3.msra.mxu0 %v1934_v8 }
 0x37c   : > { %v1796_v11 = vadd.f32 %v1795_v10, %v3014_v39  ;;  %2564 = vmatprep.subr.mxu0 %v2735_v4 }
 0x37d   : > { %v2556_v12 = vpop.f32.mrf.mxu0 }
 0x37e   : > { %v1799_v13 = vsel %vm571_vm2, %v1796_v11, -inf }
 0x37f   : > { %1800 = vmax.xlane.f32.xlu0 %v1799_v13 }
 0x381   : > { %v3067_v14 = vpop.f32.mrf.mxu1 }
 0x383   : > { %v2491_v15 = vpop.f32.mrf.mxu1 }
 0x384   : > { %v1933_v15 = vld [vmem:[%s3383_s4 + $0x30] sm:$0xff] }
 0x385   : > { %v804_v16 = vpop.f32.mrf.mxu1  ;;  %2565 = vmatpush3.msra.mxu0 %v1933_v15 }
 0x386   : > { %v805_v18 = vadd.f32 %v804_v16, %v3014_v39  ;;  %v980_v39 = vsel %vm571_vm2, %v2644_v38, 0.0  ;;  %v1932_v16 = vld [vmem:[%s3383_s4 + $0x28] sm:$0xff]  ;;  %2566 = vmatprep.subr.mxu0 %v2735_v4 }
 0x387   : > { %v2496_v21 = vpop.f32.mrf.mxu1  ;;  %2567 = vmatpush3.msra.mxu0 %v1932_v16  ;;  %v2061_v16 = vld [vmem:[%s3387_s8 + $0x78] sm:$0xff] }
 0x388   : > { %v808_v22 = vsel %vm571_vm2, %v805_v18, -inf  ;;  %2568 = vmatprep.subr.mxu0 %v2735_v4 }
 0x389   : > { %809 = vmax.xlane.f32.xlu1 %v808_v22  ;;  %2569 = vmatpush3.msra.mxu0 %v1931_v26  ;;  %v2054_v26 = vld [vmem:[%s3387_s8 + $0x40] sm:$0xff] }
 0x38a   : > { %2570 = vmatprep.subr.mxu0 %v2735_v4 }
 0x38b   : > { %2571 = vmatpush3.msra.mxu0 %v1930_v27  ;;  %v2053_v27 = vld [vmem:[%s3387_s8 + $0x38] sm:$0xff] }
 0x38c   : > { %2572 = vmatprep.subr.mxu0 %v2735_v4 }
 0x395   : > { %983 = vrot.lane.b32.xlu0 %v2984_v30, %s2741_s27 }
 0x399   : > { %1643 = vrot.lane.b32.xlu0 %v2984_v30, %s2748_s20 }
 0x39a   : > { %818 = vrot.lane.b32.xlu1 %v2984_v30, %s2739_s26 }
 0x39e   : > { %1148 = vrot.lane.b32.xlu1 %v2984_v30, %s2743_s22  ;;  %s3412_s22 = smov 32  }
 0x3a2   : > { %1313 = vrot.lane.b32.xlu1 %v2984_v30, %s2745_s24  ;;  %s3415_s24 = smov 56  }
 0x3a6   : > { %1478 = vrot.lane.b32.xlu1 %v2984_v30, %s2751_s18  ;;  %s3414_s18 = smov 48  }
 0x3aa   : > { %1808 = vrot.lane.b32.xlu1 %v2984_v30, %s2750_s21  ;;  %s2752_s21 = smov [#allocation2]  }
 0x3b8   : > { %1146 = vadd.xlane.f32.xlu0 %v1145_v34  ;;  %v1929_v34 = vld [vmem:[%s3383_s4 + $0x10] sm:$0xff] }
 0x3b9   : > { %2573 = vmatpush3.msra.mxu0 %v1929_v34  ;;  %v2047_v34 = vld [vmem:[%s3387_s8 + $0x8] sm:$0xff] }
 0x3ba   : > { %2574 = vmatprep.subr.mxu0 %v2735_v4 }
 0x3bc   : > { %1311 = vadd.xlane.f32.xlu0 %v1310_v37 }
 0x3ce   : > { %981 = vadd.xlane.f32.xlu1 %v980_v39 }
 0x400   : > { %v1471_v42 = vpop.xlane.xlu0 %1470 }
 0x401   : > { %v1472_v43 = vsub.f32 %v1466_v2, %v1471_v42 }
 0x403   : > { %v1473_v47 = vmul.f32 1.442695, %v1472_v43 }
 0x404   : > { %v1636_v40 = vpop.xlane.xlu1 %1635 }
 0x405   : > { %v1637_v41 = vsub.f32 %v1631_v7, %v1636_v40  ;;  %v1927_v40 = vld [vmem:[%s3383_s4] sm:$0xff] }
 0x407   : > { %v1638_v30 = vmul.f32 1.442695, %v1637_v41 }
 0x408   : > { %v1801_v44 = vpop.xlane.xlu0 %1800 }
 0x409   : > { %2645 = vpow2.f32 %v1638_v30  ;;  %v1802_v48 = vsub.f32 %v1796_v11, %v1801_v44 }
 0x40b   : > { %v1803_v53 = vmul.f32 1.442695, %v1802_v48 }
 0x40c   : > { %v984_v56 = vpop.permute.xlu0 %983 }
 0x410   : > { %v1644_v1 = vpop.permute.xlu0 %1643 }
 0x412   : > { %v810_v45 = vpop.xlane.xlu1 %809 }
 0x413   : > { %v811_v46 = vsub.f32 %v805_v18, %v810_v45 }
 0x415   : > { %v812_v49 = vmul.f32 1.442695, %v811_v46 }
 0x416   : > { %v2646_v50 = vpop.eup %2645  ;;  %v819_v51 = vpop.permute.xlu1 %818 }
 0x417   : > { %2647 = vpow2.f32 %v812_v49  ;;  %2498 = vmatpush3.msra.mxu1 %v819_v51  ;;  %v1640_v52 = vsel %vm571_vm2, %v2646_v50, 0.0 }
 0x418   : > { %1641 = vadd.xlane.f32.xlu1 %v1640_v52  ;;  %2507 = vmatprep.subr.mxu1 %v2735_v4  ;;  %2649 = vpow2.f32 %v1473_v47 }
 0x419   : > { %2651 = vpow2.f32 %v1803_v53 }
 0x41a   : > { %v1149_v57 = vpop.permute.xlu1 %1148 }
 0x41c   : > { %653 = vadd.xlane.f32.xlu1 %v652_v54 }
 0x41e   : > { %v1314_v62 = vpop.permute.xlu1 %1313 }
 0x422   : > { %v1479_v0 = vpop.permute.xlu1 %1478 }
 0x424   : > { %v2648_v55 = vpop.eup %2647 }
 0x425   : > { %2500 = vmatmul.mubr.msk.f32.vlgmr.msra.gmra.mxu1 %vm571_vm2, %v2648_v55  ;;  %v814_v58 = vsel %vm571_vm2, %v2648_v55, 0.0  ;;  %v2650_v59 = vpop.eup %2649 }
 0x426   : > { %2508 = vmatpush3.msra.mxu1 %v984_v56  ;;  %815 = vadd.xlane.f32.xlu0 %v814_v58  ;;  %v1475_v60 = vsel %vm571_vm2, %v2650_v59, 0.0  ;;  %v2652_v61 = vpop.eup %2651  ;;  %v1809_v2 = vpop.permute.xlu1 %1808 }
 0x427   : > { %2509 = vmatprep.mubr.msk.f32.mxu1 %vm2736_vm1, %v2735_v4  ;;  %2517 = vmatprep.subr.mxu1 %v2735_v4  ;;  %v1805_v63 = vsel %vm571_vm2, %v2652_v61, 0.0 }
 0x429   : > { %2510 = vmatmul.mubr.msk.f32.vlgmr.msra.gmra.mxu1 %vm571_vm2, %v2644_v38 }
 0x42a   : > { %2518 = vmatpush3.msra.mxu1 %v1149_v57  ;;  %1476 = vadd.xlane.f32.xlu0 %v1475_v60 }
 0x42b   : > { %2519 = vmatprep.mubr.msk.f32.mxu1 %vm2736_vm1, %v2735_v4  ;;  %2527 = vmatprep.subr.mxu1 %v2735_v4 }
 0x42d   : > { %2520 = vmatmul.mubr.msk.f32.vlgmr.msra.gmra.mxu1 %vm571_vm2, %v2640_v32 }
 0x42e   : > { %2528 = vmatpush3.msra.mxu1 %v1314_v62  ;;  %1806 = vadd.xlane.f32.xlu0 %v1805_v63 }
 0x42f   : > { %2529 = vmatprep.mubr.msk.f32.mxu1 %vm2736_vm1, %v2735_v4  ;;  %2537 = vmatprep.subr.mxu1 %v2735_v4 }
 0x431   : > { %2530 = vmatmul.mubr.msk.f32.vlgmr.msra.gmra.mxu1 %vm571_vm2, %v2642_v35  ;;  %v1928_v35 = vld [vmem:[%s3383_s4 + $0x8] sm:$0xff] }
 0x432   : > { %2538 = vmatpush3.msra.mxu1 %v1479_v0  ;;  %2539 = vmatprep.mubr.msk.f32.mxu1 %vm2736_vm1, %v2735_v4 }
 0x433   : > { %2547 = vmatprep.subr.mxu1 %v2735_v4  ;;  %2575 = vmatpush3.msra.mxu0 %v1928_v35  ;;  %v2046_v35 = vld [vmem:[%s3387_s8] sm:$0xff] }
 0x434   : > { %2576 = vmatprep.subr.mxu0 %v2735_v4 }
 0x435   : > { %2540 = vmatmul.mubr.msk.f32.vlgmr.msra.gmra.mxu1 %vm571_vm2, %v2650_v59  ;;  %2577 = vmatpush3.msra.mxu0 %v1927_v40  ;;  %v2179_v40 = vld [vmem:[%s3389_s10 + $0xe8] sm:$0xff] }
 0x436   : > { %2548 = vmatpush3.msra.mxu1 %v1644_v1  ;;  %2549 = vmatprep.mubr.msk.f32.mxu1 %vm2736_vm1, %v2735_v4 }
 0x437   : > { %2557 = vmatprep.subr.mxu1 %v2735_v4 }
 0x439   : > { %2550 = vmatmul.mubr.msk.f32.vlgmr.msra.gmra.mxu1 %vm571_vm2, %v2646_v50 }
 0x43a   : > { %2558 = vmatpush3.msra.mxu1 %v1809_v2  ;;  %2559 = vmatprep.mubr.msk.f32.mxu1 %vm2736_vm1, %v2735_v4 }
 0x43b   : > { %2093 = vmatprep.subr.mxu1 %v2061_v16 }
 0x43d   : > { %2560 = vmatmul.mubr.msk.f32.vlgmr.msra.gmra.mxu1 %vm571_vm2, %v2652_v61 }
 0x43e   : > { %2141 = vmatprep.mubr.f32.mxu1 %v2735_v4 }
 0x441   : > { %v1147_v3 = vpop.xlane.xlu0 %1146 }
 0x445   : > { %v1312_v5 = vpop.xlane.xlu0 %1311 }
 0x457   : > { %v982_v7 = vpop.xlane.xlu1 %981 }
 0x4a1   : > { %v1642_v21 = vpop.xlane.xlu1 %1641 }
 0x4a5   : > { %v654_v51 = vpop.xlane.xlu1 %653 }
 0x4af   : > { %v816_v6 = vpop.xlane.xlu0 %815 }
 0x4b0   : > { %2653 = vrcp.f32 %v816_v6 }
 0x4b1   : > { %2655 = vrcp.f32 %v982_v7 }
 0x4b2   : > { %2657 = vrcp.f32 %v1147_v3 }
 0x4b3   : > { %2659 = vrcp.f32 %v1312_v5  ;;  %v1477_v10 = vpop.xlane.xlu0 %1476 }
 0x4b4   : > { %2661 = vrcp.f32 %v1477_v10 }
 0x4b5   : > { %2663 = vrcp.f32 %v1642_v21  ;;  %v2058_v21 = vld [vmem:[%s3387_s8 + $0x60] sm:$0xff] }
 0x4b7   : > { %v1807_v29 = vpop.xlane.xlu0 %1806 }
 0x4b8   : > { %2665 = vrcp.f32 %v1807_v29  ;;  %v2051_v29 = vld [vmem:[%s3387_s8 + $0x28] sm:$0xff] }
 0x4b9   : > { %2667 = vrcp.f32 %v654_v51  ;;  %v2157_v51 = vld [vmem:[%s3389_s10 + $0x38] sm:$0xff] }
 0x4bd   : > { %v2654_v9 = vpop.eup %2653 }
 0x4be   : > { %v2656_v18 = vpop.eup %2655 }
 0x4bf   : > { %v2658_v28 = vpop.eup %2657 }
 0x4c0   : > { %v2660_v36 = vpop.eup %2659 }
 0x4c1   : > { %v2662_v41 = vpop.eup %2661 }
 0x4c2   : > { %v2664_v44 = vpop.eup %2663 }
 0x4c5   : > { %v2666_v4 = vpop.eup %2665 }
 0x4c6   : > { %v2668_v54 = vpop.eup %2667 }
 0x4c7   : > { %v729_v56 = vmul.f32 %v2668_v54, %v3067_v14  ;;  %v2394_v14 = vld [vmem:[%s3384_s5] ss:$0 sm:$0xff]  ;;  %v2171_v54 = vld [vmem:[%s3389_s10 + $0xa8] sm:$0xff] }
 0x4e5   : > { %v890_v11 = vpop.f32.mrf.mxu1 }
 0x4e6   : > { %v895_v12 = vmul.f32 %v2654_v9, %v890_v11 }
 0x4e7   : > { %v2501_v13 = vpop.f32.mrf.mxu1 }
 0x4e8   : > { %1887 = vrot.lane.b32.xlu0 %v895_v12, %s2749_s25  ;;  %s2677_s25 = sshll.u32 %s2752_s21, 4  ;;  %s2678_s25 = int_to_ptr.vmem [resolvable:$false] %s2677_s25 }
 0x4e9   : > { %v1055_v22 = vpop.f32.mrf.mxu1  ;;  %s2679_s17 = scalar_lea.vmem %s2678_s25, 256 }
 0x4ea   : > { %v1060_v23 = vmul.f32 %v2656_v18, %v1055_v22  ;;  %v2059_v18 = vld [vmem:[%s3387_s8 + $0x68] sm:$0xff]  ;;  %v2057_v22 = vld [vmem:[%s3387_s8 + $0x58] sm:$0xff] }
 0x4eb   : > { %v2511_v24 = vpop.f32.mrf.mxu1 }
 0x4ec   : > { %1891 = vrot.lane.b32.xlu1 %v1060_v23, %s2747_s29  ;;  %v2056_v23 = vld [vmem:[%s3387_s8 + $0x50] sm:$0xff]  ;;  %v2055_v24 = vld [vmem:[%s3387_s8 + $0x48] sm:$0xff] }
 0x4ed   : > { %v1220_v31 = vpop.f32.mrf.mxu1 }
 0x4ee   : > { %v1225_v32 = vmul.f32 %v2658_v28, %v1220_v31  ;;  %v2052_v28 = vld [vmem:[%s3387_s8 + $0x30] sm:$0xff]  ;;  %v2050_v31 = vld [vmem:[%s3387_s8 + $0x20] sm:$0xff] }
 0x4ef   : > { %v2521_v33 = vpop.f32.mrf.mxu1 }
 0x4f0   : > { %1895 = vrot.lane.b32.xlu1 %v1225_v32, %s2746_s15  ;;  %s3413_s15 = smov 40   ;;  %v2049_v32 = vld [vmem:[%s3387_s8 + $0x18] sm:$0xff]  ;;  %v2048_v33 = vld [vmem:[%s3387_s8 + $0x10] sm:$0xff] }
 0x4f1   : > { %v1385_v37 = vpop.f32.mrf.mxu1 }
 0x4f2   : > { %v1390_v38 = vmul.f32 %v2660_v36, %v1385_v37  ;;  %v2181_v36 = vld [vmem:[%s3389_s10 + $0xf8] sm:$0xff] }
 0x4f3   : > { %v2531_v39 = vpop.f32.mrf.mxu1  ;;  %v2165_v37 = vld [vmem:[%s3389_s10 + $0x78] sm:$0xff]  ;;  %2447 = vmatprep.subr.mxu0 %v2181_v36 }
 0x4f4   : > { %1899 = vrot.lane.b32.xlu1 %v1390_v38, %s3412_s22  ;;  %v2180_v38 = vld [vmem:[%s3389_s10 + $0xf0] sm:$0xff] }
 0x4f5   : > { %v1550_v30 = vpop.f32.mrf.mxu1  ;;  %v2164_v39 = vld [vmem:[%s3389_s10 + $0x70] sm:$0xff] }
 0x4f6   : > { %v1555_v42 = vmul.f32 %v2662_v41, %v1550_v30  ;;  %v2163_v41 = vld [vmem:[%s3389_s10 + $0x68] sm:$0xff]  ;;  %v2178_v30 = vld [vmem:[%s3389_s10 + $0xe0] sm:$0xff] }
 0x4f7   : > { %v2541_v43 = vpop.f32.mrf.mxu1 }
 0x4f8   : > { %1903 = vrot.lane.b32.xlu0 %v1555_v42, %s3413_s15  ;;  %v2162_v42 = vld [vmem:[%s3389_s10 + $0x60] sm:$0xff]  ;;  %v2177_v43 = vld [vmem:[%s3389_s10 + $0xd8] sm:$0xff]  ;;  %s2302_s15 = scalar_lea.hbm %s3393_s14, %s2403_s19 }
 0x4f9   : > { %v1715_v45 = vpop.f32.mrf.mxu1 }
 0x4fa   : > { %v1720_v46 = vmul.f32 %v2664_v44, %v1715_v45  ;;  %v2161_v44 = vld [vmem:[%s3389_s10 + $0x58] sm:$0xff]  ;;  %v2176_v45 = vld [vmem:[%s3389_s10 + $0xd0] sm:$0xff] }
 0x4fb   : > { %v2551_v47 = vpop.f32.mrf.mxu1 }
 0x4fc   : > { %1907 = vrot.lane.b32.xlu1 %v1720_v46, %s3414_s18  ;;  %v2160_v46 = vld [vmem:[%s3389_s10 + $0x50] sm:$0xff]  ;;  %v2175_v47 = vld [vmem:[%s3389_s10 + $0xc8] sm:$0xff]  ;;  %s456_s18 = sand.u32 1, %s2725_s30  }
 0x4fd   : > { %v1880_v48 = vpop.f32.mrf.mxu1  ;;  %s2291_s0 = scalar_lea.sflag [#allocation3], %s456_s18 }
 0x4fe   : > { %v1885_v49 = vmul.f32 %v2666_v4, %v1880_v48  ;;  %v2159_v4 = vld [vmem:[%s3389_s10 + $0x48] sm:$0xff]  ;;  %v2174_v48 = vld [vmem:[%s3389_s10 + $0xc0] sm:$0xff] }
 0x4ff   : > { %v2561_v50 = vpop.f32.mrf.mxu1 }
 0x500   : > { %1911 = vrot.lane.b32.xlu0 %v1885_v49, %s3415_s24  ;;  %v2158_v49 = vld [vmem:[%s3389_s10 + $0x40] sm:$0xff]  ;;  %v2173_v50 = vld [vmem:[%s3389_s10 + $0xb8] sm:$0xff]  ;;  %s2367_s24 = sshll.u32 %s456_s18, 3 }
 0x501   : > { %s458_s27 = scalar_lea.vmem [#allocation2], %s2367_s24 }
 0x502   : > { %s2304_s29 = sshll.u32 %s458_s27, 4  ;;  %s2305_s29 = int_to_ptr.vmem [resolvable:$true] %s2304_s29 }
 0x503   : > { %s2673_s20 = scalar_lea.vmem %s2305_s29, 128  ;;  %p2680_p0 = scmp.lt.s32.totalorder %s2305_s29, %s2678_s25 }
 0x504   : > { %p2674_p11 = scmp.ne.s32.totalorder %s2305_s29, %s2673_s20  ;;  %p2681_p1 = scmp.lt.s32.totalorder %s2679_s17, %s2673_s20 }
 0x506   : > { %p2675_p12 = pnand %p2674_p11, %p2866_p5  ;;  %p2682_p2 = por %p2681_p1, %p2680_p0 }
 0x508   : > { %p2676_p13 = pneg %p2675_p12 }
 0x50a   : > { %p2683_p3 = pnand %p2682_p2, %p2676_p13 }
 0x55a   : > { %v1888_v55 = vpop.permute.xlu0 %1887 }
 0x55b   : > { %v1914_v58 = vsel %vm571_vm2, %v729_v56, %v1888_v55  ;;  %v2155_v55 = vld [vmem:[%s3389_s10 + $0x28] sm:$0xff]  ;;  %v2170_v56 = vld [vmem:[%s3389_s10 + $0xa0] sm:$0xff] }
 0x55e   : > { %v1892_v52 = vpop.permute.xlu1 %1891 }
 0x55f   : > { %v1916_v59 = vsel %vm1915_vm3, %v1914_v58, %v1892_v52  ;;  %v2172_v52 = vld [vmem:[%s3389_s10 + $0xb0] sm:$0xff] }
 0x562   : > { %v1896_v53 = vpop.permute.xlu1 %1895 }
 0x563   : > { %v1918_v61 = vsel %vm1917_vm4, %v1916_v59, %v1896_v53  ;;  %v2156_v53 = vld [vmem:[%s3389_s10 + $0x30] sm:$0xff] }
 0x566   : > { %v1900_v57 = vpop.permute.xlu1 %1899 }
 0x567   : > { %v1920_v63 = vsel %vm1919_vm5, %v1918_v61, %v1900_v57  ;;  %v2154_v57 = vld [vmem:[%s3389_s10 + $0x20] sm:$0xff] }
 0x56a   : > { %v1904_v60 = vpop.permute.xlu0 %1903 }
 0x56b   : > { %v1922_v0 = vsel %vm1921_vm6, %v1920_v63, %v1904_v60 }
 0x56e   : > { %v1908_v62 = vpop.permute.xlu1 %1907 }
 0x56f   : > { %v1924_v1 = vsel %vm1923_vm7, %v1922_v0, %v1908_v62  ;;  %v2396_v62 = vld [vmem:[%s3385_s6] ss:$0 sm:$0xff] }
 0x570   : > { %v2397_v0 = vld [vmem:[%s3386_s7] ss:$0 sm:$0xff] }
 0x572   : > { %v1912_v2 = vpop.permute.xlu0 %1911 }
 0x573   : > { %v1926_v3 = vsel %vm1925_vm8, %v1924_v1, %v1912_v2 }
 0x574   : > { %2579 = vmatmul.mubr.msk.f32.vlgmr.msra.gmra.mxu0 %vm492_vm0, %v1926_v3  ;;  %v2169_v3 = vld [vmem:[%s3389_s10 + $0x98] sm:$0xff] }
 0x575   : > { %2448 = vmatpush3.msra.mxu0 %v2165_v37 }
 0x576   : > { %2449 = vmatprep.subr.mxu0 %v2180_v38  ;;  %v2400_v38 = vld [vmem:[%s3391_s12] ss:$0 sm:$0xff] }
 0x577   : > { %2450 = vmatpush3.msra.mxu0 %v2164_v39 }
 0x578   : > { %2451 = vmatprep.subr.mxu0 %v2179_v40  ;;  %v2401_v40 = vld [vmem:[%s3392_s13] ss:$0 sm:$0xff] }
 0x579   : > { %2452 = vmatpush3.msra.mxu0 %v2163_v41 }
 0x57a   : > { %2453 = vmatprep.subr.mxu0 %v2178_v30 }
 0x57b   : > { %2454 = vmatpush3.msra.mxu0 %v2162_v42 }
 0x57c   : > { %2455 = vmatprep.subr.mxu0 %v2177_v43 }
 0x57d   : > { %2456 = vmatpush3.msra.mxu0 %v2161_v44 }
 0x57e   : > { %2457 = vmatprep.subr.mxu0 %v2176_v45 }
 0x57f   : > { %2458 = vmatpush3.msra.mxu0 %v2160_v46 }
 0x580   : > { %2459 = vmatprep.subr.mxu0 %v2175_v47 }
 0x581   : > { %2460 = vmatpush3.msra.mxu0 %v2159_v4 }
 0x582   : > { %2461 = vmatprep.subr.mxu0 %v2174_v48 }
 0x583   : > { %2462 = vmatpush3.msra.mxu0 %v2158_v49 }
 0x584   : > { %2463 = vmatprep.subr.mxu0 %v2173_v50 }
 0x585   : > { %2464 = vmatpush3.msra.mxu0 %v2157_v51 }
 0x586   : > { %2465 = vmatprep.subr.mxu0 %v2172_v52 }
 0x587   : > { %2466 = vmatpush3.msra.mxu0 %v2156_v53 }
 0x588   : > { %2467 = vmatprep.subr.mxu0 %v2171_v54 }
 0x589   : > { %2468 = vmatpush3.msra.mxu0 %v2155_v55 }
 0x58a   : > { %2469 = vmatprep.subr.mxu0 %v2170_v56 }
 0x58b   : > { %2470 = vmatpush3.msra.mxu0 %v2154_v57 }
 0x58c   : > { %2471 = vmatprep.subr.mxu0 %v2169_v3 }
 0x634   : > { %v2011_v5 = vpop.f32.mrf.mxu0 }
 0x635   : > { %v2012_v6 = vadd.f32 %v2394_v14, %v2011_v5  ;;  %v2153_v14 = vld [vmem:[%s3389_s10 + $0x18] sm:$0xff]  ;;  %v2168_v5 = vld [vmem:[%s3389_s10 + $0x90] sm:$0xff] }
 0x636   : > { %v2580_v7 = vpop.f32.mrf.mxu0  ;;  %2472 = vmatpush3.msra.mxu0 %v2153_v14 }
 0x637   : > { %v2015_v8 = vadd.f32 %v2012_v6, %v2931_v17  ;;  %v2060_v17 = vld [vmem:[%s3387_s8 + $0x70] sm:$0xff]  ;;  %2473 = vmatprep.subr.mxu0 %v2168_v5  ;;  %v2167_v7 = vld [vmem:[%s3389_s10 + $0x88] sm:$0xff] }
 0x638   : > { %2094 = vmatpush1.msra.mxu1 %v2060_v17  ;;  %v2152_v6 = vld [vmem:[%s3389_s10 + $0x10] sm:$0xff] }
 0x639   : > { %v2018_v9 = vsel %vm492_vm0, %v2015_v8, 0.0  ;;  %2095 = vmatprep.subr.mxu1 %v2059_v18  ;;  %2474 = vmatpush3.msra.mxu0 %v2152_v6 }
 0x63a   : > { %2019 = vadd.xlane.f32.xlu1 %v2018_v9  ;;  %2096 = vmatpush1.msra.mxu1 %v2058_v21  ;;  %v2166_v9 = vld [vmem:[%s3389_s10 + $0x80] sm:$0xff] }
 0x63b   : > { %2097 = vmatprep.subr.mxu1 %v2057_v22  ;;  %2475 = vmatprep.subr.mxu0 %v2167_v7 }
 0x63c   : > { %2098 = vmatpush1.msra.mxu1 %v2056_v23 }
 0x63d   : > { %2099 = vmatprep.subr.mxu1 %v2055_v24  ;;  %v2399_v24 = vld [vmem:[%s3390_s11] ss:$0 sm:$0xff] }
 0x63e   : > { %2100 = vmatpush1.msra.mxu1 %v2054_v26 }
 0x63f   : > { %2101 = vmatprep.subr.mxu1 %v2053_v27 }
 0x640   : > { %2102 = vmatpush1.msra.mxu1 %v2052_v28 }
 0x641   : > { %2103 = vmatprep.subr.mxu1 %v2051_v29 }
 0x642   : > { %2104 = vmatpush1.msra.mxu1 %v2050_v31 }
 0x643   : > { %2105 = vmatprep.subr.mxu1 %v2049_v32 }
 0x644   : > { %2106 = vmatpush1.msra.mxu1 %v2048_v33 }
 0x645   : > { %2107 = vmatprep.subr.mxu1 %v2047_v34 }
 0x646   : > { %2108 = vmatpush1.msra.mxu1 %v2046_v35 }
 0x6c3   : > { %v2020_v10 = vpop.xlane.xlu1 %2019 }
 0x6c4   : > { %v2022_v11 = vmul.f32 0.015625, %v2020_v10  ;;  %v2150_v10 = vld [vmem:[%s3389_s10] sm:$0xff] }
 0x6c6   : > { %v3169_v12 = vsub.f32 %v2015_v8, %v2022_v11  ;;  %v2151_v8 = vld [vmem:[%s3389_s10 + $0x8] sm:$0xff]  ;;  %v2062_v11 = vld [vmem:[%s3388_s9] sm:$0x3] }
 0x6c7   : > { %2476 = vmatpush3.msra.mxu0 %v2151_v8 }
 0x6c8   : > { %v2024_v13 = vmul.f32 %v3169_v12, %v3169_v12  ;;  %2477 = vmatprep.subr.mxu0 %v2166_v9 }
 0x6c9   : > { %2478 = vmatpush3.msra.mxu0 %v2150_v10 }
 0x6ca   : > { %v2025_v15 = vsel %vm492_vm0, %v2024_v13, 0.0  ;;  %v2071_v13 = vrot.slane %v2062_v11, %v488_v25 }
 0x6cb   : > { %2026 = vadd.xlane.f32.xlu0 %v2025_v15 }
 0x754   : > { %v2027_v58 = vpop.xlane.xlu0 %2026 }
 0x755   : > { %v2028_v59 = vmul.f32 0.015625, %v2027_v58 }
 0x757   : > { %v2029_v60 = vadd.f32 1e-05, %v2028_v59 }
 0x759   : > { %2669 = vrsqrt.f32 %v2029_v60 }
 0x766   : > { %v2670_v61 = vpop.eup %2669 }
 0x767   : > { %v2031_v63 = vmul.f32 %v2670_v61, %v3169_v12  ;;  %v2067_v12 = vrot.slane %v2062_v11, %v484_v20 }
 0x769   : > { %v2038_v1 = vmul.f32 %v2396_v62, %v2031_v63 }
 0x76b   : > { %v2045_v2 = vadd.f32 %v2397_v0, %v2038_v1 }
 0x76d   : > { %2398 = vmatmul.mubr.msk.f32.vlgmr.msra.gmra.mxu1 %vm492_vm0, %v2045_v2 }
 0x82d   : > { %v2143_v15 = vpop.f32.mrf.mxu1 }
 0x82e   : > { %v2144_v16 = vadd.f32 %v2143_v15, %v2067_v12 }
 0x82f   : > { %v2145_v17 = vpop.f32.mrf.mxu1 }
 0x830   : > { %v2146_v18 = vadd.f32 %v2145_v17, %v2071_v13  ;;  %v2148_v22 = vmax.f32 %v2144_v16, 0.0 }
 0x832   : > { %v2149_v21 = vmax.f32 %v2146_v18, 0.0 }
 0x834   : > { %2253 = vmatprep.mubr.f32.mxu0 %v2149_v21 }
 0x835   : > { %2254 = vmatmul.mubr.f32.vlgmr.msra.gmra.mxu0 %v2148_v22 }
 0x8f5   : > { %v2479_v23 = vpop.f32.mrf.mxu0 }
 0x8f7   : > { %v2480_v26 = vpop.f32.mrf.mxu0 }
 0x8f8   : > { %v2481_v27 = vadd.f32 %v2480_v26, %v2479_v23 }
 0x8fa   : > { %v2256_v20 = vadd.f32 %v2481_v27, %v2399_v24 }
 0x8fc   : > { %v2259_v28 = vadd.f32 %v2256_v20, %v2256_v20 }
 0x8fe   : > { %v2262_v19 = vsel %vm492_vm0, %v2259_v28, 0.0 }
 0x8ff   : > { %2263 = vadd.xlane.f32.xlu0 %v2262_v19 }
 0x988   : > { %v2264_v25 = vpop.xlane.xlu0 %2263 }
 0x989   : > { %v2265_v29 = vmul.f32 0.015625, %v2264_v25 }
 0x98b   : > { %v2266_v31 = vsub.f32 %v2259_v28, %v2265_v29 }
 0x98d   : > { %v2267_v32 = vmul.f32 %v2266_v31, %v2266_v31 }
 0x98f   : > { %v2268_v33 = vsel %vm492_vm0, %v2267_v32, 0.0 }
 0x990   : > { %2269 = vadd.xlane.f32.xlu0 %v2268_v33 }
 0xa19   : > { %v2270_v34 = vpop.xlane.xlu0 %2269 }
 0xa1a   : > { %v2271_v35 = vmul.f32 0.015625, %v2270_v34 }
 0xa1c   : > { %v2272_v36 = vadd.f32 1e-05, %v2271_v35 }
 0xa1e   : > { %2671 = vrsqrt.f32 %v2272_v36 }
 0xa2b   : > { %v2672_v37 = vpop.eup %2671 }
 0xa2c   : > { %v2274_v39 = vmul.f32 %v2672_v37, %v2266_v31 }
 0xa2e   : > { %v2281_v41 = vmul.f32 %v2400_v38, %v2274_v39 }
 0xa30   : > { %v2288_v30 = vadd.f32 %v2401_v40, %v2281_v41 }
 0xa32   : > { %2289 = vst.msk [vmem:[%s458_s27] sm:$0xff] %vm492_vm0, %v2288_v30 }
 0xa33   : > { %2686 = shalt.err (!%p2683_p3)
}
 0xa34   : > { %s2687_s24 = scalar_lea.hbm %s2302_s15, 128  ;;  %s2691_s19 = scalar_lea.hbm %s3393_s14, 256 }
 0xa35   : > { %p2688_p4 = scmp.ne.s32.totalorder %s2302_s15, %s2687_s24  ;;  %p2692_p9 = scmp.lt.s32.totalorder %s2302_s15, %s3393_s14 }
 0xa36   : > { %p2693_p10 = scmp.lt.s32.totalorder %s2691_s19, %s2687_s24 }
 0xa37   : > { %p2689_p7 = pnand %p2688_p4, %p2866_p5 }
 0xa38   : > { %p2694_p11 = por %p2693_p10, %p2692_p9 }
 0xa39   : > { %p2690_p8 = pneg %p2689_p7 }
 0xa3b   : > { %p2695_p12 = pnand %p2694_p11, %p2690_p8 }
 0xa3d   : > { %2698 = shalt.err (!%p2695_p12)
}
 0xa3e   : > { %2581 = dma.vmem_to_hbm [thread:$0]  (%p2866_p5), %s2305_s29, 128, %s2302_s15, %s2291_s0  }
 0xa3f PF: > { %s3416_s22 = sld [smem:[#allocation5_spill]]  ;;  %p2587_p13 = scmp.ge.s32.totalorder %s2733_s16, 2 }
 0xa41   : > { %p2584_p0 = pnand %p2587_p13, %p2870_p6 }
 0xa43   : > { %p2585_p1 = pneg %p2584_p0 }
 0xa45   : > { %s2316_s21 = sand.u32 1, %s3416_s22  }
 0xa46   : > { %s2317_s25 = scalar_lea.sflag [#allocation3], %s2316_s21 }
 0xa47   : > { %2716 = dma.done.wait (%p2585_p1), %s2317_s25, 128  }
 0xa48   : > { %2718 = vsyncadd (%p2585_p1), %s2317_s25, 4294967168  ;;  %s3418_s16 = sld [smem:[#allocation7_spill]]  ;;  %s3421_s29 = smov %s2725_s30 }
 0xa49   : > { %s3419_s17 = sld [smem:[#allocation6_spill]] }
 0xa4a   : > { %s3420_s15 = sld [smem:[#allocation8_spill]] }
 0xa4e   : > { %p24_p2 = scmp.ge.s32.totalorder %s3418_s16, 4  }
 0xa4f   : > { %s3422_s30 = smov %s3419_s17 }
 0xa50   :  { %26 = sbr.rel (!%p24_p2) target bundleno = 5 (0x5), region = 111 }
 0xa55   :  { %2322 = vsyncpa [#allocation3], 1 }
 0xa56   :  { %2324 = vsyncpa [#allocation3 + $0x1], 1 }

</bundles_post_ra>
